<compile_context>
chip_gen: v7x
topology: tpu7x:2x2x1
jax: 0.10.0
libtpu: 0.0.40
codegen_flags: <defaults>
</compile_context>

<pallas_src>
import functools

import jax
import jax.numpy as jnp
from jax.experimental import pallas as pl
from jax.experimental.pallas import tpu as pltpu

_MIB = 1024 * 1024


# --------------------------------------------------------------------------
# Kernel
# --------------------------------------------------------------------------
def _glu_kernel(x_ref, w_ref, b_ref, o_ref, acc_ref):
    """One (TM, TN) output tile of GLU.

    x_ref:   (TM, TK)     input dtype (cast to bf16 in-kernel on the VPU)
    w_ref:   (TK, 2*TN)   bf16, packed [value | gate] columns for this tile
    b_ref:   (1, 2*TN)    f32, packed [value | gate] bias for this tile
    o_ref:   (TM, TN)     output dtype
    acc_ref: (TM, 2*TN)   f32 scratch accumulator (persists across K steps)
    """
    k = pl.program_id(2)

    @pl.when(k == 0)
    def _():
        acc_ref[...] = jnp.zeros_like(acc_ref)

    # Cast on the VPU (hidden under the weight DMA); f32 MXU accumulation.
    x = x_ref[...].astype(jnp.bfloat16)
    acc_ref[...] += jnp.dot(x, w_ref[...], preferred_element_type=jnp.float32)

    @pl.when(k == pl.num_programs(2) - 1)
    def _():
        tn = o_ref.shape[-1]
        y = acc_ref[...] + b_ref[...]          # f32 bias add (broadcast rows)
        value = y[:, :tn]                      # lane-aligned: TN % 128 == 0
        gate = y[:, tn:]
        # sigmoid(g) = 1 / (1 + exp(-g)); exp and the approximate reciprocal
        # both execute on the EUP slot, keeping the VALU nearly idle.
        sig = pl.reciprocal(1.0 + jnp.exp(-gate), approx=True)
        o_ref[...] = (value * sig).astype(o_ref.dtype)


# --------------------------------------------------------------------------
# Generation-aware sizing helpers (all trace-time Python)
# --------------------------------------------------------------------------
def _vmem_capacity_bytes() -> int:
    """Physical VMEM per TensorCore (v5e/v6e: 128 MiB, v7x: 64 MiB)."""
    try:
        return int(pltpu.get_tpu_info().vmem_capacity_bytes)
    except Exception:
        kind = jax.devices()[0].device_kind.lower()
        if "7" in kind:
            return 64 * _MIB
        if "5" in kind or "6" in kind:
            return 128 * _MIB
        return 64 * _MIB  # unknown: be conservative


def _vmem_budget() -> int:
    # ~82% of physical: leaves headroom for compiler scratch / semaphores.
    return int(_vmem_capacity_bytes() * 0.82)


def _vmem_estimate(tm, tk, tn, x_bytes, out_bytes) -> int:
    """Double-buffered working-set estimate, incl. the f32 epilogue temps."""
    two_tn = 2 * tn
    dbuf = 2 * (tm * tk * x_bytes          # x tile (original dtype)
                + tk * two_tn * 2          # packed bf16 weight tile
                + two_tn * 4               # packed f32 bias tile
                + tm * tn * out_bytes)     # output tile
    scratch = tm * two_tn * 4              # f32 accumulator scratch
    epilogue = 2 * tm * two_tn * 4         # f32 y / value / gate temporaries
    return dbuf + scratch + epilogue


def choose_glu_tile_n(in_features: int, out_features: int,
                      vmem_budget: int | None = None) -> int:
    """Pick the output tile width TN (multiple of 128) at pack time."""
    if vmem_budget is None:
        vmem_budget = _vmem_budget()
    tn_cap = 1024 if vmem_budget >= 80 * _MIB else 512
    out_up = pl.cdiv(max(out_features, 1), 128) * 128
    tn = 128
    for cand in range(min(tn_cap, out_up), 127, -128):
        if out_up % cand == 0:
            tn = cand
            break
    # Keep the double-buffered weight tile a modest slice of the budget; the
    # K grid axis (not TN) is the lever for very large in_features.
    while tn % 256 == 0 and 2 * in_features * (2 * tn) * 2 > vmem_budget // 2:
        tn //= 2
    return tn


def _select_tm_tk(batch, in_features, tn, x_bytes, out_bytes, budget):
    """Pick the batch tile TM and the K tile TK for a fixed TN."""
    big = budget >= 80 * _MIB
    tm_cap = 512 if big else 256

    # Prefer one big batch tile (no padding, no tiny-dot MXU underfill).
    if batch <= tm_cap:
        tm = batch
    else:
        tm = 0
        for cand in range(tm_cap, 7, -8):          # largest mult-of-8 divisor
            if batch % cand == 0:
                tm = cand
                break
        if tm == 0:
            tm = tm_cap                            # batch gets padded

    tk = in_features                               # resident K by default

    def fits(tm_, tk_):
        return _vmem_estimate(tm_, tk_, tn, x_bytes, out_bytes) <= budget

    # Shrink until the double-buffered working set fits (TM first, then split
    # K — splitting K re-streams the weight per batch tile, so do it last).
    while not fits(tm, tk) and tm > 128:
        tm = max(128, ((tm // 2 + 7) // 8) * 8)
    if not fits(tm, tk) and in_features % 256 == 0:
        while not fits(tm, tk) and tk % 256 == 0:
            tk //= 2
    # TODO(synk): pad K at pack time so the K-split path also covers large,
    # non-128-aligned in_features (currently falls back to resident K).
    return tm, tk


# --------------------------------------------------------------------------
# One-time parameter packing (run at load time, NOT in the per-call hot path)
# --------------------------------------------------------------------------
def pack_glu_params(weight, bias, out_features: int, tn: int | None = None):
    """Pack nn.Linear(in, 2*out) params for the kernel.

    weight: (2*OUT, IN), bias: (2*OUT,)  ->
      w_packed: (NT, IN, 2*TN) bf16 with tile j holding [value_j | gate_j],
      b_packed: (NT, 1, 2*TN) f32.
    OUT is zero-padded up to a multiple of TN (TN a multiple of 128) so the
    value/gate split and the output store stay lane-aligned.
    """
    out = out_features
    in_features = weight.shape[1]
    if tn is None:
        tn = choose_glu_tile_n(in_features, out)
    assert tn % 128 == 0

    out_pad = pl.cdiv(out, tn) * tn
    nt = out_pad // tn

    w_t = weight.astype(jnp.float32).T             # (IN, 2*OUT)
    wv, wg = w_t[:, :out], w_t[:, out:]
    bv = bias[:out].astype(jnp.float32)
    bg = bias[out:].astype(jnp.float32)
    if out_pad != out:
        extra = out_pad - out
        wv = jnp.pad(wv, ((0, 0), (0, extra)))
        wg = jnp.pad(wg, ((0, 0), (0, extra)))
        bv = jnp.pad(bv, ((0, extra),))
        bg = jnp.pad(bg, ((0, extra),))

    wv = wv.reshape(in_features, nt, tn)
    wg = wg.reshape(in_features, nt, tn)
    w_packed = jnp.concatenate([wv, wg], axis=-1)          # (IN, NT, 2*TN)
    w_packed = jnp.transpose(w_packed, (1, 0, 2))          # (NT, IN, 2*TN)
    w_packed = w_packed.astype(jnp.bfloat16)

    b_packed = jnp.concatenate([bv.reshape(nt, tn), bg.reshape(nt, tn)],
                               axis=-1).reshape(nt, 1, 2 * tn)
    b_packed = b_packed.astype(jnp.float32)
    return w_packed, b_packed


# --------------------------------------------------------------------------
# Forward pass
# --------------------------------------------------------------------------
@functools.partial(jax.jit, static_argnames=("out_features", "tm", "tk"))
def gated_linear_unit(x, w_packed, b_packed, out_features: int,
                      tm: int | None = None, tk: int | None = None):
    """x: (..., IN); w_packed/b_packed from pack_glu_params. Returns (..., OUT)."""
    in_features = x.shape[-1]
    lead = x.shape[:-1]
    x2 = x.reshape(-1, in_features)
    batch = x2.shape[0]

    nt, in_w, two_tn = w_packed.shape
    assert in_w == in_features
    tn = two_tn // 2
    out_pad = nt * tn
    assert out_pad >= out_features and out_pad % 128 == 0

    budget = _vmem_budget()
    x_bytes = jnp.dtype(x.dtype).itemsize
    out_bytes = x_bytes

    if tm is None or tk is None:
        auto_tm, auto_tk = _select_tm_tk(batch, in_features, tn,
                                         x_bytes, out_bytes, budget)
        tm = auto_tm if tm is None else tm
        tk = auto_tk if tk is None else tk

    num_i = pl.cdiv(batch, tm)
    num_k = pl.cdiv(in_features, tk)
    b_pad = num_i * tm

    x_p = x2
    if b_pad != batch:
        # Single pad pass; the bf16 cast happens in-kernel so x is read from
        # HBM exactly once, in its original dtype.
        x_p = jnp.pad(x2, ((0, b_pad - batch), (0, 0)))

    vmem_est = _vmem_estimate(tm, tk, tn, x_bytes, out_bytes)
    cp_kwargs = dict(dimension_semantics=("parallel", "parallel", "arbitrary"))
    if vmem_est > 16 * _MIB:  # v5e's default scoped-VMEM limit is 16 MiB
        cp_kwargs["vmem_limit_bytes"] = min(int(vmem_est * 1.5), budget)

    # Weight-stationary grid: weight-tile axis j outermost (each packed weight
    # tile is DMA'd once and stays resident across all batch tiles), batch
    # tiles i stream through it, reduction axis k innermost.
    out = pl.pallas_call(
        _glu_kernel,
        out_shape=jax.ShapeDtypeStruct((b_pad, out_pad), x.dtype),
        grid=(nt, num_i, num_k),
        in_specs=[
            pl.BlockSpec((tm, tk), lambda j, i, k: (i, k)),
            pl.BlockSpec((None, tk, two_tn), lambda j, i, k: (j, k, 0)),
            pl.BlockSpec((None, 1, two_tn), lambda j, i, k: (j, 0, 0)),
        ],
        out_specs=pl.BlockSpec((tm, tn), lambda j, i, k: (i, j)),
        scratch_shapes=[pltpu.VMEM((tm, 2 * tn), jnp.float32)],
        compiler_params=pltpu.CompilerParams(**cp_kwargs),
    )(x_p, w_packed, b_packed)

    if b_pad != batch or out_pad != out_features:
        out = out[:batch, :out_features]
    return out.reshape(*lead, out_features)


# --------------------------------------------------------------------------
# Demo / correctness check
# --------------------------------------------------------------------------
if __name__ == "__main__":
    key = jax.random.PRNGKey(0)
    batch, in_features, out_features = 96, 256, 512

    kx, kw, kb = jax.random.split(key, 3)
    x = jax.random.normal(kx, (batch, in_features), dtype=jnp.float32)
    # Deterministic Linear params (shape matches nn.Linear(in, 2*out)).
    bound = 1.0 / (in_features ** 0.5)
    weight = jax.random.uniform(kw, (2 * out_features, in_features),
                                minval=-bound, maxval=bound, dtype=jnp.float32)
    bias = jax.random.uniform(kb, (2 * out_features,),
                              minval=-bound, maxval=bound, dtype=jnp.float32)

    # References: bf16-quantized-operand reference (what the MXU computes) and
    # the full-precision PyTorch-equivalent reference.
    xq = x.astype(jnp.bfloat16).astype(jnp.float32)
    wq = weight.astype(jnp.bfloat16).astype(jnp.float32)
    yq = xq @ wq.T + bias
    ref_q = yq[:, :out_features] * jax.nn.sigmoid(yq[:, out_features:])
    yf = jnp.dot(x, weight.T, precision=jax.lax.Precision.HIGHEST) + bias
    ref_f = yf[:, :out_features] * jax.nn.sigmoid(yf[:, out_features:])

    # 1) Default path: generation-aware auto tiling (one-time param packing).
    w_packed, b_packed = pack_glu_params(weight, bias, out_features)
    out = jax.block_until_ready(
        gated_linear_unit(x, w_packed, b_packed, out_features))
    assert out.shape == (batch, out_features)
    assert jnp.allclose(out, ref_q, atol=5e-3, rtol=5e-3)
    assert jnp.allclose(out, ref_f, atol=5e-2, rtol=5e-2)

    # 2) Multi-tile + K-split path: exercises the weight-stationary grid and
    #    the pl.when init/finalize accumulator (correctness check only; the
    #    default path above uses the big-tile perf configuration).
    w_small, b_small = pack_glu_params(weight, bias, out_features, tn=128)
    out2 = jax.block_until_ready(
        gated_linear_unit(x, w_small, b_small, out_features, tm=32, tk=128))
    assert out2.shape == (batch, out_features)
    assert jnp.allclose(out2, ref_q, atol=5e-3, rtol=5e-3)
    assert jnp.allclose(out2, ref_f, atol=5e-2, rtol=5e-2)

    print("KERNEL_OK")
</pallas_src>

<mosaic_0001>
module attributes {stable_mosaic.version = 11 : i64} {
  func.func @_glu_kernel(%arg0: i32, %arg1: i32, %arg2: i32, %arg3: memref<96x256xf32, #tpu.memory_space<vmem>>, %arg4: memref<1x256x1024xbf16, #tpu.memory_space<vmem>>, %arg5: memref<1x1x1024xf32, #tpu.memory_space<vmem>>, %arg6: memref<96x512xf32, #tpu.memory_space<vmem>>, %arg7: memref<96x1024xf32, #tpu.memory_space<vmem>>) attributes {dimension_semantics = [#tpu.dimension_semantics<parallel>, #tpu.dimension_semantics<parallel>, #tpu.dimension_semantics<arbitrary>], iteration_bounds = array<i64: 1, 1, 1>, scalar_prefetch = 0 : i64, scratch_operands = 1 : i64, tpu.core_type = #tpu.core_type<tc>, window_params = [{transform_indices = @transform_0, window_bounds = array<i64: 96, 256>}, {transform_indices = @transform_1, window_bounds = array<i64: 1, 256, 1024>}, {transform_indices = @transform_2, window_bounds = array<i64: 1, 1, 1024>}, {transform_indices = @transform_3, window_bounds = array<i64: 96, 512>}]} {
    %c0_i32 = arith.constant 0 : i32
    %0 = arith.cmpi eq, %arg2, %c0_i32 : i32
    %1 = arith.extui %0 : i1 to i32
    %c0_i32_0 = arith.constant 0 : i32
    %2 = arith.cmpi ne, %1, %c0_i32_0 : i32
    scf.if %2 {
      %cst_11 = arith.constant 0.000000e+00 : f32
      %14 = vector.broadcast %cst_11 : f32 to vector<96x1024xf32>
      %c0_12 = arith.constant 0 : index
      %c0_13 = arith.constant 0 : index
      %15 = vector.load %arg7[%c0_12, %c0_13] : memref<96x1024xf32, #tpu.memory_space<vmem>>, vector<96x1024xf32>
      tpu.vector_store %arg7[%c0_12, %c0_13], %14 {strides = array<i32>} : memref<96x1024xf32, #tpu.memory_space<vmem>>, vector<96x1024xf32>,
    } else {
    }
    %c0 = arith.constant 0 : index
    %c0_1 = arith.constant 0 : index
    %3 = vector.load %arg3[%c0, %c0_1] : memref<96x256xf32, #tpu.memory_space<vmem>>, vector<96x256xf32>
    %4 = arith.truncf %3 : vector<96x256xf32> to vector<96x256xbf16>
    %c0_2 = arith.constant 0 : index
    %c0_3 = arith.constant 0 : index
    %5 = vector.load %arg7[%c0_2, %c0_3] : memref<96x1024xf32, #tpu.memory_space<vmem>>, vector<96x1024xf32>
    %c0_4 = arith.constant 0 : index
    %c0_5 = arith.constant 0 : index
    %c0_6 = arith.constant 0 : index
    %6 = vector.load %arg4[%c0_4, %c0_5, %c0_6] : memref<1x256x1024xbf16, #tpu.memory_space<vmem>>, vector<1x256x1024xbf16>
    %7 = vector.shape_cast %6 : vector<1x256x1024xbf16> to vector<256x1024xbf16>
    %cst = arith.constant dense<0.000000e+00> : vector<96x1024xf32>
    %8 = tpu.matmul %4, %7, %cst {dimension_numbers = #tpu.dot_dimension_numbers<[1], [0], [0], [1], [0, 0, 1, 1], [], []>} : vector<96x256xbf16>, vector<256x1024xbf16>, vector<96x1024xf32> -> vector<96x1024xf32>
    %9 = arith.addf %5, %8 : vector<96x1024xf32>
    %c0_7 = arith.constant 0 : index
    %c0_8 = arith.constant 0 : index
    %10 = vector.load %arg7[%c0_7, %c0_8] : memref<96x1024xf32, #tpu.memory_space<vmem>>, vector<96x1024xf32>
    tpu.vector_store %arg7[%c0_7, %c0_8], %9 {strides = array<i32>} : memref<96x1024xf32, #tpu.memory_space<vmem>>, vector<96x1024xf32>,
    %c0_i32_9 = arith.constant 0 : i32
    %11 = arith.cmpi eq, %arg2, %c0_i32_9 : i32
    %12 = arith.extui %11 : i1 to i32
    %c0_i32_10 = arith.constant 0 : i32
    %13 = arith.cmpi ne, %12, %c0_i32_10 : i32
    scf.if %13 {
      %c0_11 = arith.constant 0 : index
      %c0_12 = arith.constant 0 : index
      %14 = vector.load %arg7[%c0_11, %c0_12] : memref<96x1024xf32, #tpu.memory_space<vmem>>, vector<96x1024xf32>
      %c0_13 = arith.constant 0 : index
      %c0_14 = arith.constant 0 : index
      %c0_15 = arith.constant 0 : index
      %15 = vector.load %arg5[%c0_13, %c0_14, %c0_15] : memref<1x1x1024xf32, #tpu.memory_space<vmem>>, vector<1x1x1024xf32>
      %16 = vector.shape_cast %15 : vector<1x1x1024xf32> to vector<1x1024xf32>
      %17 = vector.broadcast %16 : vector<1x1024xf32> to vector<96x1024xf32>
      %18 = arith.addf %14, %17 : vector<96x1024xf32>
      %19 = vector.extract_strided_slice %18 {offsets = [0, 0], sizes = [96, 512], strides = [1, 1]} : vector<96x1024xf32> to vector<96x512xf32>
      %20 = vector.extract_strided_slice %18 {offsets = [0, 512], sizes = [96, 512], strides = [1, 1]} : vector<96x1024xf32> to vector<96x512xf32>
      %cst_16 = arith.constant 0.000000e+00 : f32
      %21 = vector.broadcast %cst_16 : f32 to vector<96x512xf32>
      %22 = arith.subf %21, %20 : vector<96x512xf32>
      %23 = math.exp %22 : vector<96x512xf32>
      %cst_17 = arith.constant 1.000000e+00 : f32
      %24 = vector.broadcast %cst_17 : f32 to vector<96x512xf32>
      %25 = arith.addf %24, %23 : vector<96x512xf32>
      %26 = tpu.reciprocal %25 {approx = true} : vector<96x512xf32> -> vector<96x512xf32>
      %27 = arith.mulf %19, %26 : vector<96x512xf32>
      %c0_18 = arith.constant 0 : index
      %c0_19 = arith.constant 0 : index
      %28 = vector.load %arg6[%c0_18, %c0_19] : memref<96x512xf32, #tpu.memory_space<vmem>>, vector<96x512xf32>
      tpu.vector_store %arg6[%c0_18, %c0_19], %27 {strides = array<i32>} : memref<96x512xf32, #tpu.memory_space<vmem>>, vector<96x512xf32>,
    } else {
    }
    return
  }
  func.func @transform_0(%arg0: i32, %arg1: i32, %arg2: i32) -> (i32, i32) {
    %c0_i32 = arith.constant 0 : i32
    return %arg1, %arg2 : i32, i32
  }
  func.func @transform_1(%arg0: i32, %arg1: i32, %arg2: i32) -> (i32, i32, i32) {
    %c0_i32 = arith.constant 0 : i32
    %c0_i32_0 = arith.constant 0 : i32
    return %arg0, %arg2, %c0_i32 : i32, i32, i32
  }
  func.func @transform_2(%arg0: i32, %arg1: i32, %arg2: i32) -> (i32, i32, i32) {
    %c0_i32 = arith.constant 0 : i32
    %c0_i32_0 = arith.constant 0 : i32
    %c0_i32_1 = arith.constant 0 : i32
    return %arg0, %c0_i32, %c0_i32_0 : i32, i32, i32
  }
  func.func @transform_3(%arg0: i32, %arg1: i32, %arg2: i32) -> (i32, i32) {
    %c0_i32 = arith.constant 0 : i32
    return %arg1, %arg0 : i32, i32
  }
}

</mosaic_0001>

<bundles_post_ra>
// kernel: gated_linear_unit.1
= control target key start
LH: loop header
LB: loop body
LE: loop exit
PB: predicated region body
PF: predicated region fallthrough
CT: control target
= control target key end

     0   :  { %8 = vsyncpa [#allocation4], 0  ;;  %s3209_s0 = inlined_call_operand.hbm [shape: f32[96,256], index: 0, kind: input, shape index: {}]   ;;  %s3210_s1 = inlined_call_operand.hbm [shape: bf16[1,256,1024], index: 1, kind: input, shape index: {}]   ;;  %s3211_s2 = inlined_call_operand.hbm [shape: f32[1,1,1024], index: 2, kind: input, shape index: {}]   ;;  %s3212_s3 = inlined_call_operand.hbm [shape: f32[96,512], index: 3, kind: output, shape index: {}]  }
   0x1   :  { %9 = vsyncpa [#allocation7], 0 }
   0x2   :  { %10 = vsyncpa [#allocation5], 0  ;;  %s2631_s12 = smov [#allocation6]   ;;  %s2537_s16 = scalar_lea.hbm %s3210_s1, 16384 }
   0x3   :  { %s28_s13 = sshll.u32 %s2631_s12, 4  ;;  %p2538_p0 = scmp.ne.s32.totalorder %s3210_s1, %s2537_s16  ;;  %s29_s13 = int_to_ptr.vmem [resolvable:$true] %s28_s13 }
   0x4   :  { %p2541_p1 = scmp.lt.u32.totalorder %s2537_s16, %s3210_s1 }
   0x6   :  { %p2543_p2 = pnand %p2541_p1, %p2538_p0 }
   0x8   :  { %2546 = shalt.err (!%p2543_p2)
}
   0x9   :  { %s2547_s21 = scalar_lea.vmem %s29_s13, 16384  ;;  %p2552_p4 = scmp.lt.s32.totalorder %s29_s13, %s29_s13 }
   0xa   :  { %p2548_p3 = scmp.ne.s32.totalorder %s29_s13, %s2547_s21  ;;  %p2553_p5 = scmp.lt.s32.totalorder %s2547_s21, %s2547_s21 }
   0xc   :  { %p2554_p6 = por %p2553_p5, %p2552_p4 }
   0xe   :  { %p2555_p7 = pnand %p2554_p6, %p2548_p3 }
  0x10   :  { %2558 = shalt.err (!%p2555_p7)
}
  0x11   :  { %s2632_s22 = smov 512   ;;  %s2633_s23 = smov 32  }
  0x12   :  { %34 = dma.hbm_to_vmem [thread:$0]  %s3210_s1, 16384, %s29_s13, [#allocation7], %s2632_s22, %s2632_s22, %s2633_s23  }
  0x13   :  { %s2634_s26 = smov [#allocation3]   ;;  %s2559_s30 = scalar_lea.hbm %s3209_s0, 3072 }
  0x14   :  { %s16_s27 = sshll.u32 %s2634_s26, 4  ;;  %p2560_p8 = scmp.ne.s32.totalorder %s3209_s0, %s2559_s30  ;;  %s17_s27 = int_to_ptr.vmem [resolvable:$true] %s16_s27 }
  0x15   :  { %p2563_p9 = scmp.lt.u32.totalorder %s2559_s30, %s3209_s0 }
  0x17   :  { %p2565_p10 = pnand %p2563_p9, %p2560_p8 }
  0x19   :  { %2568 = shalt.err (!%p2565_p10)
}
  0x1a   :  { %s2569_s8 = scalar_lea.vmem %s17_s27, 3072  ;;  %p2574_p12 = scmp.lt.s32.totalorder %s17_s27, %s17_s27 }
  0x1b   :  { %p2570_p11 = scmp.ne.s32.totalorder %s17_s27, %s2569_s8  ;;  %p2575_p13 = scmp.lt.s32.totalorder %s2569_s8, %s2569_s8 }
  0x1d   :  { %p2576_p0 = por %p2575_p13, %p2574_p12 }
  0x1f   :  { %p2577_p1 = pnand %p2576_p0, %p2570_p11 }
  0x21   :  { %2580 = shalt.err (!%p2577_p1)
}
  0x22   :  { %s2635_s1 = smov 256   ;;  %s2636_s9 = smov 16  }
  0x23   :  { %22 = dma.hbm_to_vmem [thread:$0]  %s3209_s0, 3072, %s17_s27, [#allocation4], %s2635_s1, %s2635_s1, %s2636_s9  }
  0x24   :  { %s2637_s12 = smov [#allocation8]   ;;  %s2581_s16 = scalar_lea.hbm %s3211_s2, 128 }
  0x25   :  { %s41_s13 = sshll.u32 %s2637_s12, 4  ;;  %p2582_p2 = scmp.ne.s32.totalorder %s3211_s2, %s2581_s16  ;;  %s42_s13 = int_to_ptr.vmem [resolvable:$true] %s41_s13 }
  0x26   :  { %p2585_p3 = scmp.lt.u32.totalorder %s2581_s16, %s3211_s2 }
  0x28   :  { %p2587_p4 = pnand %p2585_p3, %p2582_p2 }
  0x2a   :  { %2590 = shalt.err (!%p2587_p4)
}
  0x2b   :  { %s2591_s21 = scalar_lea.vmem %s42_s13, 128  ;;  %p2596_p6 = scmp.lt.s32.totalorder %s42_s13, %s42_s13 }
  0x2c   :  { %p2592_p5 = scmp.ne.s32.totalorder %s42_s13, %s2591_s21  ;;  %p2597_p7 = scmp.lt.s32.totalorder %s2591_s21, %s2591_s21 }
  0x2e   :  { %p2598_p8 = por %p2597_p7, %p2596_p6 }
  0x30   :  { %p2599_p9 = pnand %p2598_p8, %p2592_p5 }
  0x32   :  { %2602 = shalt.err (!%p2599_p9)
}
  0x33   :  { %44 = dma.hbm_to_vmem [thread:$0]  %s3211_s2, 128, %s42_s13, [#allocation7]  }
  0x34   :  { %2625 = dma.done.wait [#allocation4], 3072  }
  0x35   :  { %2626 = vsyncadd [#allocation4], 4294964224 }
  0x36   :  { %2627 = dma.done.wait [#allocation7], 16512  }
  0x37   :  { %2628 = vsyncadd [#allocation7], 4294950784  ;;  %v286_v0 = vld [vmem:[#allocation6] sm:$0xff]  ;;  %v287_v2 = vld [vmem:[#allocation6 + $0x8] sm:$0xff]  ;;  %s2638_s2 = smov [#allocation9]  }
  0x38   :  { %v290_v1 = vld [vmem:[#allocation6 + $0x20] sm:$0xff]  ;;  %v291_v4 = vld [vmem:[#allocation6 + $0x28] sm:$0xff]  ;;  %v157_v54 = vld [vmem:[#allocation3 + $0x18] sm:$0xff]  ;;  %s2196_s25 = sshll.u32 %s2638_s2, 4  ;;  %s2197_s25 = int_to_ptr.vmem [resolvable:$true] %s2196_s25 }
  0x39   :  { %v2210_v3 = vcombine.high %v286_v0, %v290_v1  ;;  %v2209_v5 = vcombine.low %v286_v0, %v290_v1  ;;  %v294_v6 = vld [vmem:[#allocation6 + $0x40] sm:$0xff]  ;;  %v2212_v8 = vcombine.high %v287_v2, %v291_v4  ;;  %v2211_v9 = vcombine.low %v287_v2, %v291_v4  ;;  %v295_v11 = vld [vmem:[#allocation6 + $0x48] sm:$0xff]  ;;  %s2603_s26 = scalar_lea.vmem %s2197_s25, 6144  ;;  %p2608_p11 = scmp.lt.s32.totalorder %s2197_s25, %s2197_s25 }
  0x3a   :  { %v298_v7 = vld [vmem:[#allocation6 + $0x60] sm:$0xff]  ;;  %v299_v12 = vld [vmem:[#allocation6 + $0x68] sm:$0xff]  ;;  %p2604_p10 = scmp.ne.s32.totalorder %s2197_s25, %s2603_s26  ;;  %p2609_p12 = scmp.lt.s32.totalorder %s2603_s26, %s2603_s26 }
  0x3b   :  { %v2218_v10 = vcombine.high %v294_v6, %v298_v7  ;;  %v302_v13 = vld [vmem:[#allocation6 + $0x80] sm:$0xff]  ;;  %1054 = vmatprep.subr.bf16.mxu0 %v2210_v3  ;;  %v2220_v14 = vcombine.high %v295_v11, %v299_v12  ;;  %v303_v16 = vld [vmem:[#allocation6 + $0x88] sm:$0xff]  ;;  %1147 = vmatprep.subr.bf16.mxu1 %v2212_v8  ;;  %v2217_v18 = vcombine.low %v294_v6, %v298_v7 }
  0x3c   :  { %v306_v15 = vld [vmem:[#allocation6 + $0xa0] sm:$0xff]  ;;  %v307_v17 = vld [vmem:[#allocation6 + $0xa8] sm:$0xff]  ;;  %1055 = vmatpush1.bf16.msra.mxu0 %v2209_v5  ;;  %1148 = vmatpush1.bf16.msra.mxu1 %v2211_v9  ;;  %v2219_v19 = vcombine.low %v295_v11, %v299_v12  ;;  %p2610_p13 = por %p2609_p12, %p2608_p11 }
  0x3d   :  { %1056 = vmatprep.subr.bf16.mxu0 %v2218_v10  ;;  %v2226_v20 = vcombine.high %v302_v13, %v306_v15  ;;  %1149 = vmatprep.subr.bf16.mxu1 %v2220_v14  ;;  %v2228_v21 = vcombine.high %v303_v16, %v307_v17  ;;  %v310_v22 = vld [vmem:[#allocation6 + $0xc0] sm:$0xff]  ;;  %v311_v24 = vld [vmem:[#allocation6 + $0xc8] sm:$0xff]  ;;  %v2225_v26 = vcombine.low %v302_v13, %v306_v15 }
  0x3e   :  { %v314_v23 = vld [vmem:[#allocation6 + $0xe0] sm:$0xff]  ;;  %v315_v25 = vld [vmem:[#allocation6 + $0xe8] sm:$0xff]  ;;  %v2227_v27 = vcombine.low %v303_v16, %v307_v17  ;;  %p2611_p0 = pnand %p2610_p13, %p2604_p10 }
  0x3f   :  { %v2234_v28 = vcombine.high %v310_v22, %v314_v23  ;;  %v2236_v29 = vcombine.high %v311_v24, %v315_v25  ;;  %v318_v30 = vld [vmem:[#allocation6 + $0x100] sm:$0xff]  ;;  %v319_v32 = vld [vmem:[#allocation6 + $0x108] sm:$0xff]  ;;  %v2233_v34 = vcombine.low %v310_v22, %v314_v23  ;;  %v2235_v35 = vcombine.low %v311_v24, %v315_v25 }
  0x40   :  { %1057 = vmatpush1.bf16.msra.mxu0 %v2217_v18  ;;  %1150 = vmatpush1.bf16.msra.mxu1 %v2219_v19  ;;  %v322_v31 = vld [vmem:[#allocation6 + $0x120] sm:$0xff]  ;;  %v323_v33 = vld [vmem:[#allocation6 + $0x128] sm:$0xff] }
  0x41   :  { %1058 = vmatprep.subr.bf16.mxu0 %v2226_v20  ;;  %1151 = vmatprep.subr.bf16.mxu1 %v2228_v21  ;;  %v2242_v36 = vcombine.high %v318_v30, %v322_v31  ;;  %v2244_v37 = vcombine.high %v319_v32, %v323_v33  ;;  %v326_v38 = vld [vmem:[#allocation6 + $0x140] sm:$0xff]  ;;  %v327_v40 = vld [vmem:[#allocation6 + $0x148] sm:$0xff]  ;;  %v2241_v42 = vcombine.low %v318_v30, %v322_v31 }
  0x42   :  { %v330_v39 = vld [vmem:[#allocation6 + $0x160] sm:$0xff]  ;;  %v331_v41 = vld [vmem:[#allocation6 + $0x168] sm:$0xff]  ;;  %v2243_v43 = vcombine.low %v319_v32, %v323_v33 }
  0x43   :  { %v2250_v44 = vcombine.high %v326_v38, %v330_v39  ;;  %v2252_v45 = vcombine.high %v327_v40, %v331_v41  ;;  %v334_v46 = vld [vmem:[#allocation6 + $0x180] sm:$0xff]  ;;  %v335_v48 = vld [vmem:[#allocation6 + $0x188] sm:$0xff]  ;;  %v2249_v50 = vcombine.low %v326_v38, %v330_v39  ;;  %v2251_v51 = vcombine.low %v327_v40, %v331_v41 }
  0x44   :  { %1059 = vmatpush1.bf16.msra.mxu0 %v2225_v26  ;;  %1152 = vmatpush1.bf16.msra.mxu1 %v2227_v27  ;;  %v338_v47 = vld [vmem:[#allocation6 + $0x1a0] sm:$0xff]  ;;  %v339_v49 = vld [vmem:[#allocation6 + $0x1a8] sm:$0xff] }
  0x45   :  { %1060 = vmatprep.subr.bf16.mxu0 %v2234_v28  ;;  %1153 = vmatprep.subr.bf16.mxu1 %v2236_v29  ;;  %v2258_v52 = vcombine.high %v334_v46, %v338_v47  ;;  %v155_v53 = vld [vmem:[#allocation3 + $0x8] sm:$0xff]  ;;  %v2260_v55 = vcombine.high %v335_v48, %v339_v49  ;;  %v342_v56 = vld [vmem:[#allocation6 + $0x1c0] sm:$0xff]  ;;  %v2257_v61 = vcombine.low %v334_v46, %v338_v47 }
  0x46   :  { %v346_v57 = vld [vmem:[#allocation6 + $0x1e0] sm:$0xff]  ;;  %v2698_v58 = vpack.c.bf16 %v157_v54, %v155_v53  ;;  %v343_v59 = vld [vmem:[#allocation6 + $0x1c8] sm:$0xff]  ;;  %v2259_v62 = vcombine.low %v335_v48, %v339_v49 }
  0x47   :  { %v347_v60 = vld [vmem:[#allocation6 + $0x1e8] sm:$0xff]  ;;  %v2266_v63 = vcombine.high %v342_v56, %v346_v57  ;;  %v350_v1 = vld [vmem:[#allocation6 + $0x200] sm:$0xff]  ;;  %v2265_v5 = vcombine.low %v342_v56, %v346_v57 }
  0x48   :  { %1061 = vmatpush1.bf16.msra.mxu0 %v2233_v34  ;;  %1154 = vmatpush1.bf16.msra.mxu1 %v2235_v35  ;;  %v2268_v0 = vcombine.high %v343_v59, %v347_v60  ;;  %v354_v2 = vld [vmem:[#allocation6 + $0x220] sm:$0xff]  ;;  %v351_v3 = vld [vmem:[#allocation6 + $0x208] sm:$0xff]  ;;  %v2267_v6 = vcombine.low %v343_v59, %v347_v60 }
  0x49   :  { %1062 = vmatprep.subr.bf16.mxu0 %v2242_v36  ;;  %1155 = vmatprep.subr.bf16.mxu1 %v2244_v37  ;;  %v355_v4 = vld [vmem:[#allocation6 + $0x228] sm:$0xff]  ;;  %v2274_v7 = vcombine.high %v350_v1, %v354_v2  ;;  %v358_v9 = vld [vmem:[#allocation6 + $0x240] sm:$0xff]  ;;  %v2273_v13 = vcombine.low %v350_v1, %v354_v2  ;;  %v288_v2 = vld [vmem:[#allocation6 + $0x10] sm:$0xff] }
  0x4a   :  { %1086 = vmatprep.mubr.bf16.mxu0 %v2698_v58  ;;  %1179 = vmatprep.mubr.bf16.mxu1 %v2698_v58  ;;  %v2276_v8 = vcombine.high %v351_v3, %v355_v4  ;;  %v362_v10 = vld [vmem:[#allocation6 + $0x260] sm:$0xff]  ;;  %v359_v11 = vld [vmem:[#allocation6 + $0x248] sm:$0xff]  ;;  %v2275_v14 = vcombine.low %v351_v3, %v355_v4  ;;  %v292_v3 = vld [vmem:[#allocation6 + $0x30] sm:$0xff] }
  0x4b   :  { %v363_v12 = vld [vmem:[#allocation6 + $0x268] sm:$0xff]  ;;  %v2282_v15 = vcombine.high %v358_v9, %v362_v10  ;;  %v366_v17 = vld [vmem:[#allocation6 + $0x280] sm:$0xff]  ;;  %v2281_v21 = vcombine.low %v358_v9, %v362_v10  ;;  %v289_v4 = vld [vmem:[#allocation6 + $0x18] sm:$0xff]  ;;  %v2214_v10 = vcombine.high %v288_v2, %v292_v3 }
  0x4c   :  { %1063 = vmatpush1.bf16.msra.mxu0 %v2241_v42  ;;  %1156 = vmatpush1.bf16.msra.mxu1 %v2243_v43  ;;  %v2284_v16 = vcombine.high %v359_v11, %v363_v12  ;;  %v370_v18 = vld [vmem:[#allocation6 + $0x2a0] sm:$0xff]  ;;  %v367_v19 = vld [vmem:[#allocation6 + $0x288] sm:$0xff]  ;;  %v2283_v22 = vcombine.low %v359_v11, %v363_v12  ;;  %v296_v12 = vld [vmem:[#allocation6 + $0x50] sm:$0xff] }
  0x4d   :  { %1064 = vmatprep.subr.bf16.mxu0 %v2250_v44  ;;  %1157 = vmatprep.subr.bf16.mxu1 %v2252_v45  ;;  %v371_v20 = vld [vmem:[#allocation6 + $0x2a8] sm:$0xff]  ;;  %v2290_v23 = vcombine.high %v366_v17, %v370_v18  ;;  %v374_v25 = vld [vmem:[#allocation6 + $0x2c0] sm:$0xff]  ;;  %v2289_v29 = vcombine.low %v366_v17, %v370_v18  ;;  %v161_v18 = vld [vmem:[#allocation3 + $0x38] sm:$0xff] }
  0x4e   :  { %v2292_v24 = vcombine.high %v367_v19, %v371_v20  ;;  %v378_v26 = vld [vmem:[#allocation6 + $0x2e0] sm:$0xff]  ;;  %v375_v27 = vld [vmem:[#allocation6 + $0x2c8] sm:$0xff]  ;;  %v2291_v30 = vcombine.low %v367_v19, %v371_v20  ;;  %v2213_v19 = vcombine.low %v288_v2, %v292_v3 }
  0x4f   :  { %v379_v28 = vld [vmem:[#allocation6 + $0x2e8] sm:$0xff]  ;;  %v2298_v31 = vcombine.high %v374_v25, %v378_v26  ;;  %v382_v33 = vld [vmem:[#allocation6 + $0x300] sm:$0xff]  ;;  %v2297_v37 = vcombine.low %v374_v25, %v378_v26  ;;  %v305_v26 = vld [vmem:[#allocation6 + $0x98] sm:$0xff] }
  0x50   :  { %1065 = vmatpush1.bf16.msra.mxu0 %v2249_v50  ;;  %1158 = vmatpush1.bf16.msra.mxu1 %v2251_v51  ;;  %v2300_v32 = vcombine.high %v375_v27, %v379_v28  ;;  %v386_v34 = vld [vmem:[#allocation6 + $0x320] sm:$0xff]  ;;  %v383_v35 = vld [vmem:[#allocation6 + $0x308] sm:$0xff]  ;;  %v2299_v38 = vcombine.low %v375_v27, %v379_v28  ;;  %v309_v27 = vld [vmem:[#allocation6 + $0xb8] sm:$0xff] }
  0x51   :  { %1066 = vmatprep.subr.bf16.mxu0 %v2258_v52  ;;  %1159 = vmatprep.subr.bf16.mxu1 %v2260_v55  ;;  %v387_v36 = vld [vmem:[#allocation6 + $0x328] sm:$0xff]  ;;  %v2306_v39 = vcombine.high %v382_v33, %v386_v34  ;;  %v390_v41 = vld [vmem:[#allocation6 + $0x340] sm:$0xff]  ;;  %v2305_v45 = vcombine.low %v382_v33, %v386_v34  ;;  %v2232_v33 = vcombine.high %v305_v26, %v309_v27  ;;  %v312_v34 = vld [vmem:[#allocation6 + $0xd0] sm:$0xff] }
  0x52   :  { %v2308_v40 = vcombine.high %v383_v35, %v387_v36  ;;  %v394_v42 = vld [vmem:[#allocation6 + $0x360] sm:$0xff]  ;;  %v391_v43 = vld [vmem:[#allocation6 + $0x348] sm:$0xff]  ;;  %v2307_v46 = vcombine.low %v383_v35, %v387_v36  ;;  %v316_v35 = vld [vmem:[#allocation6 + $0xf0] sm:$0xff] }
  0x53   :  { %v395_v44 = vld [vmem:[#allocation6 + $0x368] sm:$0xff]  ;;  %v2314_v47 = vcombine.high %v390_v41, %v394_v42  ;;  %v398_v49 = vld [vmem:[#allocation6 + $0x380] sm:$0xff]  ;;  %v2313_v53 = vcombine.low %v390_v41, %v394_v42  ;;  %v313_v36 = vld [vmem:[#allocation6 + $0xd8] sm:$0xff]  ;;  %v2231_v42 = vcombine.low %v305_v26, %v309_v27 }
  0x54   :  { %1067 = vmatpush1.bf16.msra.mxu0 %v2257_v61  ;;  %1160 = vmatpush1.bf16.msra.mxu1 %v2259_v62  ;;  %v2316_v48 = vcombine.high %v391_v43, %v395_v44  ;;  %v402_v50 = vld [vmem:[#allocation6 + $0x3a0] sm:$0xff]  ;;  %v399_v51 = vld [vmem:[#allocation6 + $0x388] sm:$0xff]  ;;  %v2315_v54 = vcombine.low %v391_v43, %v395_v44  ;;  %v2238_v43 = vcombine.high %v312_v34, %v316_v35 }
  0x55   :  { %1068 = vmatprep.subr.bf16.mxu0 %v2266_v63  ;;  %1161 = vmatprep.subr.bf16.mxu1 %v2268_v0  ;;  %v403_v52 = vld [vmem:[#allocation6 + $0x3a8] sm:$0xff]  ;;  %v2322_v55 = vcombine.high %v398_v49, %v402_v50  ;;  %v406_v57 = vld [vmem:[#allocation6 + $0x3c0] sm:$0xff]  ;;  %v2321_v62 = vcombine.low %v398_v49, %v402_v50  ;;  %v325_v49 = vld [vmem:[#allocation6 + $0x138] sm:$0xff]  ;;  %v2237_v50 = vcombine.low %v312_v34, %v316_v35 }
  0x56   :  { %v2324_v56 = vcombine.high %v399_v51, %v403_v52  ;;  %v410_v59 = vld [vmem:[#allocation6 + $0x3e0] sm:$0xff]  ;;  %v407_v60 = vld [vmem:[#allocation6 + $0x3c8] sm:$0xff]  ;;  %v2323_v63 = vcombine.low %v399_v51, %v403_v52  ;;  %v164_v52 = vld [vmem:[#allocation3 + $0x50] sm:$0xff] }
  0x57   :  { %v411_v61 = vld [vmem:[#allocation6 + $0x3e8] sm:$0xff]  ;;  %v2330_v0 = vcombine.high %v406_v57, %v410_v59  ;;  %v162_v51 = vld [vmem:[#allocation3 + $0x40] sm:$0xff]  ;;  %v172_v35 = vld [vmem:[#allocation3 + $0x90] sm:$0xff] }
  0x58   :  { %1069 = vmatpush1.bf16.msra.mxu0 %v2265_v5  ;;  %1162 = vmatpush1.bf16.msra.mxu1 %v2267_v6  ;;  %v2332_v1 = vcombine.high %v407_v60, %v411_v61  ;;  %v293_v5 = vld [vmem:[#allocation6 + $0x38] sm:$0xff]  ;;  %v2329_v6 = vcombine.low %v406_v57, %v410_v59  ;;  %v2331_v9 = vcombine.low %v407_v60, %v411_v61  ;;  %v159_v17 = vld [vmem:[#allocation3 + $0x28] sm:$0xff]  ;;  %v332_v57 = vld [vmem:[#allocation6 + $0x170] sm:$0xff] }
  0x59   :  { %1070 = vmatprep.subr.bf16.mxu0 %v2274_v7  ;;  %1163 = vmatprep.subr.bf16.mxu1 %v2276_v8  ;;  %v154_v7 = vld [vmem:[#allocation3] sm:$0xff]  ;;  %v156_v8 = vld [vmem:[#allocation3 + $0x10] sm:$0xff]  ;;  %v2216_v11 = vcombine.high %v289_v4, %v293_v5  ;;  %v2215_v20 = vcombine.low %v289_v4, %v293_v5  ;;  %v2704_v25 = vpack.c.bf16 %v161_v18, %v159_v17  ;;  %v329_v59 = vld [vmem:[#allocation6 + $0x158] sm:$0xff] }
  0x5a   :  { %v333_v60 = vld [vmem:[#allocation6 + $0x178] sm:$0xff]  ;;  %v2718_v61 = vpack.c.bf16 %v164_v52, %v162_v51  ;;  %v336_v4 = vld [vmem:[#allocation6 + $0x190] sm:$0xff]  ;;  %v170_v34 = vld [vmem:[#allocation3 + $0x80] sm:$0xff] }
  0x5b   :  { %v2256_v3 = vcombine.high %v329_v59, %v333_v60  ;;  %v340_v5 = vld [vmem:[#allocation6 + $0x1b0] sm:$0xff]  ;;  %v345_v18 = vld [vmem:[#allocation6 + $0x1d8] sm:$0xff] }
  0x5c   :  { %1071 = vmatpush1.bf16.msra.mxu0 %v2273_v13  ;;  %1164 = vmatpush1.bf16.msra.mxu1 %v2275_v14  ;;  %v300_v13 = vld [vmem:[#allocation6 + $0x70] sm:$0xff]  ;;  %v297_v14 = vld [vmem:[#allocation6 + $0x58] sm:$0xff] }
  0x5d   :  { %1072 = vmatprep.subr.bf16.mxu0 %v2282_v15  ;;  %1165 = vmatprep.subr.bf16.mxu1 %v2284_v16  ;;  %v2702_v15 = vpack.c.bf16 %v156_v8, %v154_v7  ;;  %v301_v16 = vld [vmem:[#allocation6 + $0x78] sm:$0xff]  ;;  %v2221_v28 = vcombine.low %v296_v12, %v300_v13  ;;  %v348_v17 = vld [vmem:[#allocation6 + $0x1f0] sm:$0xff] }
  0x5e   :  { %v337_v7 = vld [vmem:[#allocation6 + $0x198] sm:$0xff]  ;;  %v368_v52 = vld [vmem:[#allocation6 + $0x290] sm:$0xff] }
  0x5f   :  { %v341_v8 = vld [vmem:[#allocation6 + $0x1b8] sm:$0xff] }
  0x60   :  { %1073 = vmatpush1.bf16.msra.mxu0 %v2281_v21  ;;  %1166 = vmatpush1.bf16.msra.mxu1 %v2283_v22  ;;  %v2222_v21 = vcombine.high %v296_v12, %v300_v13  ;;  %v2224_v22 = vcombine.high %v297_v14, %v301_v16  ;;  %v2255_v12 = vcombine.low %v329_v59, %v333_v60  ;;  %v174_v59 = vld [vmem:[#allocation3 + $0xa0] sm:$0xff]  ;;  %v176_v60 = vld [vmem:[#allocation3 + $0xb0] sm:$0xff] }
  0x61   :  { %1074 = vmatprep.subr.bf16.mxu0 %v2290_v23  ;;  %1167 = vmatprep.subr.bf16.mxu1 %v2292_v24  ;;  %v304_v23 = vld [vmem:[#allocation6 + $0x90] sm:$0xff]  ;;  %v2262_v13 = vcombine.high %v336_v4, %v340_v5 }
  0x62   :  { %v308_v24 = vld [vmem:[#allocation6 + $0xb0] sm:$0xff] }
  0x63   :  { %v2229_v41 = vcombine.low %v304_v23, %v308_v24 }
  0x64   :  { %1075 = vmatpush1.bf16.msra.mxu0 %v2289_v29  ;;  %1168 = vmatpush1.bf16.msra.mxu1 %v2291_v30  ;;  %v158_v29 = vld [vmem:[#allocation3 + $0x20] sm:$0xff]  ;;  %v160_v30 = vld [vmem:[#allocation3 + $0x30] sm:$0xff] }
  0x65   :  { %1076 = vmatprep.subr.bf16.mxu0 %v2298_v31  ;;  %1169 = vmatprep.subr.bf16.mxu1 %v2300_v32  ;;  %v2223_v31 = vcombine.low %v297_v14, %v301_v16  ;;  %v2230_v32 = vcombine.high %v304_v23, %v308_v24  ;;  %v2264_v14 = vcombine.high %v337_v7, %v341_v8  ;;  %v344_v16 = vld [vmem:[#allocation6 + $0x1d0] sm:$0xff] }
  0x66   :  { %v2261_v23 = vcombine.low %v336_v4, %v340_v5  ;;  %v2263_v24 = vcombine.low %v337_v7, %v341_v8  ;;  %v2270_v26 = vcombine.high %v344_v16, %v348_v17  ;;  %v381_v4 = vld [vmem:[#allocation6 + $0x2f8] sm:$0xff]  ;;  %v2742_v5 = vpack.c.bf16 %v176_v60, %v174_v59 }
  0x68   :  { %1077 = vmatpush1.bf16.msra.mxu0 %v2297_v37  ;;  %1170 = vmatpush1.bf16.msra.mxu1 %v2299_v38  ;;  %v317_v37 = vld [vmem:[#allocation6 + $0xf8] sm:$0xff]  ;;  %v2710_v38 = vpack.c.bf16 %v160_v30, %v158_v29  ;;  %v356_v29 = vld [vmem:[#allocation6 + $0x230] sm:$0xff] }
  0x69   :  { %1078 = vmatprep.subr.bf16.mxu0 %v2306_v39  ;;  %1171 = vmatprep.subr.bf16.mxu1 %v2308_v40  ;;  %v163_v39 = vld [vmem:[#allocation3 + $0x48] sm:$0xff]  ;;  %v165_v40 = vld [vmem:[#allocation3 + $0x58] sm:$0xff]  ;;  %v2240_v44 = vcombine.high %v313_v36, %v317_v37 }
  0x6c   :  { %1079 = vmatpush1.bf16.msra.mxu0 %v2305_v45  ;;  %1172 = vmatpush1.bf16.msra.mxu1 %v2307_v46  ;;  %v320_v45 = vld [vmem:[#allocation6 + $0x110] sm:$0xff] }
  0x6d   :  { %1080 = vmatprep.subr.bf16.mxu0 %v2314_v47  ;;  %1173 = vmatprep.subr.bf16.mxu1 %v2316_v48  ;;  %v324_v46 = vld [vmem:[#allocation6 + $0x130] sm:$0xff]  ;;  %v2712_v47 = vpack.c.bf16 %v165_v40, %v163_v39  ;;  %v321_v48 = vld [vmem:[#allocation6 + $0x118] sm:$0xff] }
  0x6e   :  { %v360_v40 = vld [vmem:[#allocation6 + $0x250] sm:$0xff] }
  0x70   :  { %1081 = vmatpush1.bf16.msra.mxu0 %v2313_v53  ;;  %1174 = vmatpush1.bf16.msra.mxu1 %v2315_v54  ;;  %v2239_v53 = vcombine.low %v313_v36, %v317_v37  ;;  %v2246_v54 = vcombine.high %v320_v45, %v324_v46 }
  0x71   :  { %1082 = vmatprep.subr.bf16.mxu0 %v2322_v55  ;;  %1175 = vmatprep.subr.bf16.mxu1 %v2324_v56  ;;  %v2248_v55 = vcombine.high %v321_v48, %v325_v49  ;;  %v328_v56 = vld [vmem:[#allocation6 + $0x150] sm:$0xff] }
  0x72   :  { %v2254_v2 = vcombine.high %v328_v56, %v332_v57 }
  0x74   :  { %1083 = vmatpush1.bf16.msra.mxu0 %v2321_v62  ;;  %1176 = vmatpush1.bf16.msra.mxu1 %v2323_v63  ;;  %v167_v62 = vld [vmem:[#allocation3 + $0x68] sm:$0xff]  ;;  %v169_v63 = vld [vmem:[#allocation3 + $0x78] sm:$0xff] }
  0x75   :  { %1084 = vmatprep.subr.bf16.mxu0 %v2330_v0  ;;  %1177 = vmatprep.subr.bf16.mxu1 %v2332_v1  ;;  %v2245_v0 = vcombine.low %v320_v45, %v324_v46  ;;  %v2247_v1 = vcombine.low %v321_v48, %v325_v49  ;;  %v175_v45 = vld [vmem:[#allocation3 + $0xa8] sm:$0xff]  ;;  %v177_v46 = vld [vmem:[#allocation3 + $0xb8] sm:$0xff] }
  0x78   :  { %1085 = vmatpush1.bf16.msra.mxu0 %v2329_v6  ;;  %1178 = vmatpush1.bf16.msra.mxu1 %v2331_v9  ;;  %v2720_v6 = vpack.c.bf16 %v169_v63, %v167_v62  ;;  %v2253_v9 = vcombine.low %v328_v56, %v332_v57  ;;  %v373_v56 = vld [vmem:[#allocation6 + $0x2b8] sm:$0xff] }
  0x79   :  { %1240 = vmatprep.subr.bf16.mxu0 %v2214_v10  ;;  %1333 = vmatprep.subr.bf16.mxu1 %v2216_v11  ;;  %v166_v10 = vld [vmem:[#allocation3 + $0x60] sm:$0xff]  ;;  %v168_v11 = vld [vmem:[#allocation3 + $0x70] sm:$0xff] }
  0x7b   :  { %1087 = vmatmul.mubr.bf16.vlgmr.msra.gmra.mrb[0].mxu0 %v2702_v15  ;;  %1180 = vmatmul.mubr.bf16.vlgmr.msra.gmra.mrb[0].mxu1 %v2702_v15 }
  0x7c   :  { %1241 = vmatpush1.bf16.msra.mxu0 %v2213_v19  ;;  %1334 = vmatpush1.bf16.msra.mxu1 %v2215_v20  ;;  %v349_v19 = vld [vmem:[#allocation6 + $0x1f8] sm:$0xff]  ;;  %v2726_v20 = vpack.c.bf16 %v168_v11, %v166_v10  ;;  %v384_v11 = vld [vmem:[#allocation6 + $0x310] sm:$0xff] }
  0x7d   :  { %1242 = vmatprep.subr.bf16.mxu0 %v2222_v21  ;;  %1335 = vmatprep.subr.bf16.mxu1 %v2224_v22  ;;  %v171_v21 = vld [vmem:[#allocation3 + $0x88] sm:$0xff]  ;;  %v173_v22 = vld [vmem:[#allocation3 + $0x98] sm:$0xff]  ;;  %v2272_v27 = vcombine.high %v345_v18, %v349_v19  ;;  %v2271_v36 = vcombine.low %v345_v18, %v349_v19 }
  0x7e   :  { %1096 = vmatprep.mubr.bf16.mxu0 %v2704_v25  ;;  %1189 = vmatprep.mubr.bf16.mxu1 %v2704_v25  ;;  %v2728_v30 = vpack.c.bf16 %v173_v22, %v171_v21  ;;  %v392_v21 = vld [vmem:[#allocation6 + $0x350] sm:$0xff] }
  0x7f   :  { %v396_v22 = vld [vmem:[#allocation6 + $0x370] sm:$0xff] }
  0x80   :  { %1243 = vmatpush1.bf16.msra.mxu0 %v2221_v28  ;;  %1336 = vmatpush1.bf16.msra.mxu1 %v2223_v31  ;;  %v352_v28 = vld [vmem:[#allocation6 + $0x210] sm:$0xff]  ;;  %v353_v31 = vld [vmem:[#allocation6 + $0x218] sm:$0xff] }
  0x81   :  { %1244 = vmatprep.subr.bf16.mxu0 %v2230_v32  ;;  %1337 = vmatprep.subr.bf16.mxu1 %v2232_v33  ;;  %v357_v32 = vld [vmem:[#allocation6 + $0x238] sm:$0xff]  ;;  %v2269_v33 = vcombine.low %v344_v16, %v348_v17  ;;  %v2278_v37 = vcombine.high %v352_v28, %v356_v29  ;;  %v2277_v48 = vcombine.low %v352_v28, %v356_v29 }
  0x82   :  { %v2280_v39 = vcombine.high %v353_v31, %v357_v32  ;;  %v2279_v49 = vcombine.low %v353_v31, %v357_v32  ;;  %v2318_v28 = vcombine.high %v392_v21, %v396_v22  ;;  %v400_v31 = vld [vmem:[#allocation6 + $0x390] sm:$0xff] }
  0x83   :  { %1097 = vmatmul.mubr.bf16.gmra.mrb[4].mxu0 %v2710_v38  ;;  %1190 = vmatmul.mubr.bf16.gmra.mrb[4].mxu1 %v2710_v38  ;;  %v404_v32 = vld [vmem:[#allocation6 + $0x3b0] sm:$0xff] }
  0x84   :  { %1245 = vmatpush1.bf16.msra.mxu0 %v2229_v41  ;;  %1338 = vmatpush1.bf16.msra.mxu1 %v2231_v42  ;;  %v364_v41 = vld [vmem:[#allocation6 + $0x270] sm:$0xff]  ;;  %v361_v42 = vld [vmem:[#allocation6 + $0x258] sm:$0xff] }
  0x85   :  { %1246 = vmatprep.subr.bf16.mxu0 %v2238_v43  ;;  %1339 = vmatprep.subr.bf16.mxu1 %v2240_v44  ;;  %v365_v43 = vld [vmem:[#allocation6 + $0x278] sm:$0xff]  ;;  %v2734_v44 = vpack.c.bf16 %v172_v35, %v170_v34  ;;  %v2285_v57 = vcombine.low %v360_v40, %v364_v41  ;;  %v2317_v35 = vcombine.low %v392_v21, %v396_v22 }
  0x86   :  { %1106 = vmatprep.mubr.bf16.mxu0 %v2712_v47  ;;  %1199 = vmatprep.mubr.bf16.mxu1 %v2712_v47  ;;  %v2288_v51 = vcombine.high %v361_v42, %v365_v43  ;;  %v2287_v62 = vcombine.low %v361_v42, %v365_v43  ;;  %v405_v34 = vld [vmem:[#allocation6 + $0x3b8] sm:$0xff]  ;;  %v2325_v43 = vcombine.low %v400_v31, %v404_v32 }
  0x87   :  { %v413_v42 = vld [vmem:[#allocation6 + $0x3f8] sm:$0xff] }
  0x88   :  { %1247 = vmatpush1.bf16.msra.mxu0 %v2237_v50  ;;  %1340 = vmatpush1.bf16.msra.mxu1 %v2239_v53  ;;  %v2286_v50 = vcombine.high %v360_v40, %v364_v41  ;;  %v372_v53 = vld [vmem:[#allocation6 + $0x2b0] sm:$0xff]  ;;  %v409_v41 = vld [vmem:[#allocation6 + $0x3d8] sm:$0xff] }
  0x89   :  { %1248 = vmatprep.subr.bf16.mxu0 %v2246_v54  ;;  %1341 = vmatprep.subr.bf16.mxu1 %v2248_v55  ;;  %v2736_v54 = vpack.c.bf16 %v177_v46, %v175_v45  ;;  %v369_v55 = vld [vmem:[#allocation6 + $0x298] sm:$0xff]  ;;  %v2294_v63 = vcombine.high %v368_v52, %v372_v53  ;;  %v2293_v7 = vcombine.low %v368_v52, %v372_v53  ;;  %v412_v40 = vld [vmem:[#allocation6 + $0x3f0] sm:$0xff] }
  0x8a   :  { %v2295_v8 = vcombine.low %v369_v55, %v373_v56 }
  0x8b   :  { %1107 = vmatmul.mubr.bf16.gmra.mrb[8].mxu0 %v2718_v61  ;;  %1200 = vmatmul.mubr.bf16.gmra.mrb[8].mxu1 %v2718_v61 }
  0x8c   :  { %1249 = vmatpush1.bf16.msra.mxu0 %v2245_v0  ;;  %1342 = vmatpush1.bf16.msra.mxu1 %v2247_v1  ;;  %v2296_v0 = vcombine.high %v369_v55, %v373_v56  ;;  %v376_v1 = vld [vmem:[#allocation6 + $0x2d0] sm:$0xff] }
  0x8d   :  { %1250 = vmatprep.subr.bf16.mxu0 %v2254_v2  ;;  %1343 = vmatprep.subr.bf16.mxu1 %v2256_v3  ;;  %v380_v2 = vld [vmem:[#allocation6 + $0x2f0] sm:$0xff]  ;;  %v377_v3 = vld [vmem:[#allocation6 + $0x2d8] sm:$0xff] }
  0x8e   :  { %1116 = vmatprep.mubr.bf16.mxu0 %v2720_v6  ;;  %1209 = vmatprep.mubr.bf16.mxu1 %v2720_v6  ;;  %v2304_v10 = vcombine.high %v377_v3, %v381_v4  ;;  %v2301_v16 = vcombine.low %v376_v1, %v380_v2  ;;  %v2303_v17 = vcombine.low %v377_v3, %v381_v4  ;;  %v1719_v4 = vlaneseq }
  0x90   :  { %1251 = vmatpush1.bf16.msra.mxu0 %v2253_v9  ;;  %1344 = vmatpush1.bf16.msra.mxu1 %v2255_v12  ;;  %v2302_v9 = vcombine.high %v376_v1, %v380_v2  ;;  %v388_v12 = vld [vmem:[#allocation6 + $0x330] sm:$0xff] }
  0x91   :  { %1252 = vmatprep.subr.bf16.mxu0 %v2262_v13  ;;  %1345 = vmatprep.subr.bf16.mxu1 %v2264_v14  ;;  %v385_v13 = vld [vmem:[#allocation6 + $0x318] sm:$0xff]  ;;  %v2310_v18 = vcombine.high %v384_v11, %v388_v12 }
  0x92   :  { %v389_v14 = vld [vmem:[#allocation6 + $0x338] sm:$0xff] }
  0x93   :  { %1117 = vmatmul.mubr.bf16.gmra.mrb[12].mxu0 %v2726_v20  ;;  %1210 = vmatmul.mubr.bf16.gmra.mrb[12].mxu1 %v2726_v20  ;;  %v2312_v19 = vcombine.high %v385_v13, %v389_v14 }
  0x94   :  { %1253 = vmatpush1.bf16.msra.mxu0 %v2261_v23  ;;  %1346 = vmatpush1.bf16.msra.mxu1 %v2263_v24  ;;  %v393_v23 = vld [vmem:[#allocation6 + $0x358] sm:$0xff] }
  0x95   :  { %1254 = vmatprep.subr.bf16.mxu0 %v2270_v26  ;;  %1347 = vmatprep.subr.bf16.mxu1 %v2272_v27  ;;  %v397_v24 = vld [vmem:[#allocation6 + $0x378] sm:$0xff]  ;;  %v2309_v26 = vcombine.low %v384_v11, %v388_v12  ;;  %v2311_v27 = vcombine.low %v385_v13, %v389_v14  ;;  %v1720_v11 = vshrl.u32 %v1719_v4, 7 }
  0x96   :  { %1126 = vmatprep.mubr.bf16.mxu0 %v2728_v30  ;;  %1219 = vmatprep.mubr.bf16.mxu1 %v2728_v30  ;;  %v2320_v29 = vcombine.high %v393_v23, %v397_v24 }
  0x98   :  { %1255 = vmatpush1.bf16.msra.mxu0 %v2269_v33  ;;  %1348 = vmatpush1.bf16.msra.mxu1 %v2271_v36  ;;  %v401_v33 = vld [vmem:[#allocation6 + $0x398] sm:$0xff]  ;;  %v2319_v36 = vcombine.low %v393_v23, %v397_v24  ;;  %v1721_v24 = vsub.s32 0, %v1720_v11 }
  0x99   :  { %1256 = vmatprep.subr.bf16.mxu0 %v2278_v37  ;;  %1349 = vmatprep.subr.bf16.mxu1 %v2280_v39  ;;  %v2326_v37 = vcombine.high %v400_v31, %v404_v32  ;;  %v408_v39 = vld [vmem:[#allocation6 + $0x3d0] sm:$0xff]  ;;  %v2327_v45 = vcombine.low %v401_v33, %v405_v34  ;;  %v1725_v31 = vsub.s32 1, %v1720_v11 }
  0x9a   :  { %v2334_v46 = vcombine.high %v408_v39, %v412_v40 }
  0x9b   :  { %1127 = vmatmul.mubr.bf16.gmra.mrb[16].mxu0 %v2734_v44  ;;  %1220 = vmatmul.mubr.bf16.gmra.mrb[16].mxu1 %v2734_v44 }
  0x9c   :  { %1257 = vmatpush1.bf16.msra.mxu0 %v2277_v48  ;;  %1350 = vmatpush1.bf16.msra.mxu1 %v2279_v49  ;;  %v2336_v48 = vcombine.high %v409_v41, %v413_v42  ;;  %v2333_v49 = vcombine.low %v408_v39, %v412_v40 }
  0x9d   :  { %1258 = vmatprep.subr.bf16.mxu0 %v2286_v50  ;;  %1351 = vmatprep.subr.bf16.mxu1 %v2288_v51  ;;  %v2335_v50 = vcombine.low %v409_v41, %v413_v42 }
  0x9e   :  { %1136 = vmatprep.mubr.bf16.mxu0 %v2736_v54  ;;  %1229 = vmatprep.mubr.bf16.mxu1 %v2736_v54 }
  0xa0   :  { %1259 = vmatpush1.bf16.msra.mxu0 %v2285_v57  ;;  %1352 = vmatpush1.bf16.msra.mxu1 %v2287_v62 }
  0xa1   :  { %1260 = vmatprep.subr.bf16.mxu0 %v2294_v63  ;;  %1353 = vmatprep.subr.bf16.mxu1 %v2296_v0 }
  0xa3   :  { %1137 = vmatmul.mubr.bf16.gmra.mrb[20].mxu0 %v2742_v5  ;;  %1230 = vmatmul.mubr.bf16.gmra.mrb[20].mxu1 %v2742_v5 }
  0xa4   :  { %1261 = vmatpush1.bf16.msra.mxu0 %v2293_v7  ;;  %1354 = vmatpush1.bf16.msra.mxu1 %v2295_v8 }
  0xa5   :  { %1262 = vmatprep.subr.bf16.mxu0 %v2302_v9  ;;  %1355 = vmatprep.subr.bf16.mxu1 %v2304_v10 }
  0xa6   :  { %1272 = vmatprep.mubr.bf16.mxu0 %v2698_v58  ;;  %1365 = vmatprep.mubr.bf16.mxu1 %v2698_v58  ;;  %v2328_v58 = vcombine.high %v401_v33, %v405_v34 }
  0xa8   :  { %1263 = vmatpush1.bf16.msra.mxu0 %v2301_v16  ;;  %1356 = vmatpush1.bf16.msra.mxu1 %v2303_v17  ;;  %v1733_v16 = vsub.s32 3, %v1720_v11  ;;  %v1717_v17 = vld [vmem:[#allocation8] sm:$0xff] }
  0xa9   :  { %1264 = vmatprep.subr.bf16.mxu0 %v2310_v18  ;;  %1357 = vmatprep.subr.bf16.mxu1 %v2312_v19  ;;  %v2853_v34 = vrot.slane %v1717_v17, %v1721_v24 }
  0xac   :  { %1265 = vmatpush1.bf16.msra.mxu0 %v2309_v26  ;;  %1358 = vmatpush1.bf16.msra.mxu1 %v2311_v27  ;;  %v2844_v26 = vrot.slane %v1717_v17, %v1733_v16 }
  0xad   :  { %1266 = vmatprep.subr.bf16.mxu0 %v2318_v28  ;;  %1359 = vmatprep.subr.bf16.mxu1 %v2320_v29  ;;  %v1729_v29 = vsub.s32 2, %v1720_v11 }
  0xb0   :  { %1267 = vmatpush1.bf16.msra.mxu0 %v2317_v35  ;;  %1360 = vmatpush1.bf16.msra.mxu1 %v2319_v36  ;;  %v2855_v35 = vrot.slane %v1717_v17, %v1729_v29  ;;  %v2857_v36 = vrot.slane %v1717_v17, %v1725_v31  ;;  %v1737_v31 = vsub.s32 4, %v1720_v11 }
  0xb1   :  { %1268 = vmatprep.subr.bf16.mxu0 %v2326_v37  ;;  %1361 = vmatprep.subr.bf16.mxu1 %v2328_v58 }
  0xb4   :  { %1269 = vmatpush1.bf16.msra.mxu0 %v2325_v43  ;;  %1362 = vmatpush1.bf16.msra.mxu1 %v2327_v45 }
  0xb5   :  { %1270 = vmatprep.subr.bf16.mxu0 %v2334_v46  ;;  %1363 = vmatprep.subr.bf16.mxu1 %v2336_v48 }
  0xb8   :  { %1271 = vmatpush1.bf16.msra.mxu0 %v2333_v49  ;;  %1364 = vmatpush1.bf16.msra.mxu1 %v2335_v50 }
  0xbb   :  { %1273 = vmatmul.mubr.bf16.vlgmr.msra.gmra.mrb[24].mxu0 %v2702_v15  ;;  %1366 = vmatmul.mubr.bf16.vlgmr.msra.gmra.mrb[24].mxu1 %v2702_v15 }
  0xbc   :  { %1282 = vmatprep.mubr.bf16.mxu0 %v2704_v25  ;;  %1375 = vmatprep.mubr.bf16.mxu1 %v2704_v25 }
  0xc3   :  { %1283 = vmatmul.mubr.bf16.gmra.mrb[28].mxu0 %v2710_v38  ;;  %1376 = vmatmul.mubr.bf16.gmra.mrb[28].mxu1 %v2710_v38 }
  0xc4   :  { %1292 = vmatprep.mubr.bf16.mxu0 %v2712_v47  ;;  %1385 = vmatprep.mubr.bf16.mxu1 %v2712_v47 }
  0xcb   :  { %1293 = vmatmul.mubr.bf16.gmra.mrb[32].mxu0 %v2718_v61  ;;  %1386 = vmatmul.mubr.bf16.gmra.mrb[32].mxu1 %v2718_v61 }
  0xcc   :  { %1302 = vmatprep.mubr.bf16.mxu0 %v2720_v6  ;;  %1395 = vmatprep.mubr.bf16.mxu1 %v2720_v6 }
  0xd3   :  { %1303 = vmatmul.mubr.bf16.gmra.mrb[36].mxu0 %v2726_v20  ;;  %1396 = vmatmul.mubr.bf16.gmra.mrb[36].mxu1 %v2726_v20 }
  0xd4   :  { %1312 = vmatprep.mubr.bf16.mxu0 %v2728_v30  ;;  %1405 = vmatprep.mubr.bf16.mxu1 %v2728_v30 }
  0xdb   :  { %1313 = vmatmul.mubr.bf16.gmra.mrb[40].mxu0 %v2734_v44  ;;  %1406 = vmatmul.mubr.bf16.gmra.mrb[40].mxu1 %v2734_v44 }
  0xdc   :  { %1322 = vmatprep.mubr.bf16.mxu0 %v2736_v54  ;;  %1415 = vmatprep.mubr.bf16.mxu1 %v2736_v54 }
  0xe3   :  { %1323 = vmatmul.mubr.bf16.gmra.mrb[44].mxu0 %v2742_v5  ;;  %1416 = vmatmul.mubr.bf16.gmra.mrb[44].mxu1 %v2742_v5 }
 0x14e   :  { %v2770_v15 = vpop.f32.mrb[0].mxu0  ;;  %v2772_v25 = vpop.f32.mrb[0].mxu1 }
 0x14f   :  { %v2774_v38 = vpop.f32.mrb[1].mxu0  ;;  %v2776_v47 = vpop.f32.mrb[1].mxu1 }
 0x150   :  { %v2778_v61 = vpop.f32.mrb[2].mxu0  ;;  %v2780_v6 = vpop.f32.mrb[2].mxu1 }
 0x151   :  { %v2782_v20 = vpop.f32.mrb[3].mxu0  ;;  %v2784_v30 = vpop.f32.mrb[3].mxu1 }
 0x156   :  { %v2786_v44 = vpop.f32.mrb[4].mxu0  ;;  %v2788_v51 = vpop.f32.mrb[4].mxu1 }
 0x157   :  { %v2790_v52 = vpop.f32.mrb[5].mxu0  ;;  %v2792_v53 = vpop.f32.mrb[5].mxu1 }
 0x158   :  { %v2794_v54 = vpop.f32.mrb[6].mxu0  ;;  %v2796_v55 = vpop.f32.mrb[6].mxu1 }
 0x159   :  { %v2798_v56 = vpop.f32.mrb[7].mxu0  ;;  %v2800_v57 = vpop.f32.mrb[7].mxu1 }
 0x15e   :  { %v2802_v59 = vpop.f32.mrb[8].mxu0  ;;  %v2804_v60 = vpop.f32.mrb[8].mxu1 }
 0x15f   :  { %v2806_v62 = vpop.f32.mrb[9].mxu0  ;;  %v2808_v63 = vpop.f32.mrb[9].mxu1 }
 0x160   :  { %v2810_v0 = vpop.f32.mrb[10].mxu0  ;;  %v2812_v1 = vpop.f32.mrb[10].mxu1 }
 0x161   :  { %v2814_v2 = vpop.f32.mrb[11].mxu0  ;;  %v2816_v3 = vpop.f32.mrb[11].mxu1 }
 0x162   :  { %3213 = vst [vmem:[#allocation13_spill] sm:$0xff] %v2816_v3 }
 0x166   :  { %v2818_v5 = vpop.f32.mrb[12].mxu0  ;;  %v2820_v7 = vpop.f32.mrb[12].mxu1 }
 0x167   :  { %3214 = vst [vmem:[#allocation14_spill] sm:$0xff] %v2818_v5  ;;  %3215 = vst [vmem:[#allocation15_spill] sm:$0xff] %v2820_v7  ;;  %v2822_v8 = vpop.f32.mrb[13].mxu0  ;;  %v2824_v9 = vpop.f32.mrb[13].mxu1 }
 0x168   :  { %3216 = vst [vmem:[#allocation16_spill] sm:$0xff] %v2822_v8  ;;  %3217 = vst [vmem:[#allocation17_spill] sm:$0xff] %v2824_v9  ;;  %v2826_v10 = vpop.f32.mrb[14].mxu0  ;;  %v2828_v12 = vpop.f32.mrb[14].mxu1 }
 0x169   :  { %3218 = vst [vmem:[#allocation18_spill] sm:$0xff] %v2826_v10  ;;  %3219 = vst [vmem:[#allocation19_spill] sm:$0xff] %v2828_v12  ;;  %v2830_v13 = vpop.f32.mrb[15].mxu0  ;;  %v2832_v14 = vpop.f32.mrb[15].mxu1 }
 0x16a   :  { %3220 = vst [vmem:[#allocation20_spill] sm:$0xff] %v2830_v13  ;;  %3221 = vst [vmem:[#allocation21_spill] sm:$0xff] %v2832_v14 }
 0x16e   :  { %v2834_v18 = vpop.f32.mrb[16].mxu0  ;;  %v2836_v19 = vpop.f32.mrb[16].mxu1 }
 0x16f   :  { %3222 = vst [vmem:[#allocation22_spill] sm:$0xff] %v2834_v18  ;;  %3223 = vst [vmem:[#allocation23_spill] sm:$0xff] %v2836_v19  ;;  %v2838_v21 = vpop.f32.mrb[17].mxu0  ;;  %v2840_v22 = vpop.f32.mrb[17].mxu1 }
 0x170   :  { %3224 = vst [vmem:[#allocation24_spill] sm:$0xff] %v2838_v21  ;;  %3225 = vst [vmem:[#allocation25_spill] sm:$0xff] %v2840_v22  ;;  %v2842_v23 = vpop.f32.mrb[18].mxu0  ;;  %v2846_v27 = vpop.f32.mrb[18].mxu1 }
 0x171   :  { %3226 = vst [vmem:[#allocation26_spill] sm:$0xff] %v2842_v23  ;;  %3227 = vst [vmem:[#allocation27_spill] sm:$0xff] %v2846_v27  ;;  %v2848_v28 = vpop.f32.mrb[19].mxu0  ;;  %v1227_v32 = vpop.f32.mrb[19].mxu1 }
 0x172   :  { %3228 = vst [vmem:[#allocation28_spill] sm:$0xff] %v2848_v28  ;;  %v2851_v33 = vadd.f32 %v2844_v26, %v1227_v32  ;;  %v1745_v32 = vsub.s32 6, %v1720_v11 }
 0x174   :  { %3229 = vst [vmem:[#allocation29_spill] sm:$0xff] %v2851_v33 }
 0x176   :  { %v1138_v37 = vpop.f32.mrb[20].mxu0  ;;  %v1231_v39 = vpop.f32.mrb[20].mxu1 }
 0x177   :  { %v2860_v58 = vadd.f32 %v2853_v34, %v1138_v37  ;;  %v1140_v40 = vpop.f32.mrb[21].mxu0  ;;  %v2863_v41 = vadd.f32 %v2855_v35, %v1231_v39  ;;  %v1233_v43 = vpop.f32.mrb[21].mxu1  ;;  %v1741_v37 = vsub.s32 5, %v1720_v11  ;;  %v1749_v39 = vsub.s32 7, %v1720_v11 }
 0x178   :  { %v2866_v42 = vadd.f32 %v2857_v36, %v1140_v40  ;;  %v1142_v45 = vpop.f32.mrb[22].mxu0  ;;  %v2869_v46 = vadd.f32 %v2844_v26, %v1233_v43  ;;  %v1235_v49 = vpop.f32.mrb[22].mxu1  ;;  %v2883_v40 = vrot.slane %v1717_v17, %v1737_v31  ;;  %v2885_v43 = vrot.slane %v1717_v17, %v1745_v32 }
 0x179   :  { %3230 = vst [vmem:[#allocation30_spill] sm:$0xff] %v2860_v58  ;;  %3231 = vst [vmem:[#allocation31_spill] sm:$0xff] %v2863_v41  ;;  %v2872_v48 = vadd.f32 %v2853_v34, %v1142_v45  ;;  %v1144_v50 = vpop.f32.mrb[23].mxu0  ;;  %v2875_v4 = vadd.f32 %v2855_v35, %v1235_v49  ;;  %v1237_v24 = vpop.f32.mrb[23].mxu1  ;;  %v2887_v45 = vrot.slane %v1717_v17, %v1741_v37 }
 0x17a   :  { %3232 = vst [vmem:[#allocation32_spill] sm:$0xff] %v2866_v42  ;;  %3233 = vst [vmem:[#allocation33_spill] sm:$0xff] %v2869_v46  ;;  %v2878_v16 = vadd.f32 %v2857_v36, %v1144_v50  ;;  %v2881_v29 = vadd.f32 %v2844_v26, %v1237_v24  ;;  %v2896_v11 = vadd.f32 %v2853_v34, %v2770_v15 }
 0x17b   :  { %3234 = vst [vmem:[#allocation34_spill] sm:$0xff] %v2872_v48  ;;  %3235 = vst [vmem:[#allocation35_spill] sm:$0xff] %v2875_v4  ;;  %v2889_v48 = vrot.slane %v1717_v17, %v1749_v39 }
 0x17c   :  { %3236 = vst [vmem:[#allocation36_spill] sm:$0xff] %v2878_v16  ;;  %3237 = vst [vmem:[#allocation37_spill] sm:$0xff] %v2881_v29 }
 0x18e   :  { %v1274_v49 = vpop.f32.mrb[24].mxu0  ;;  %v1367_v16 = vpop.f32.mrb[24].mxu1 }
 0x18f   :  { %v1763_v50 = vadd.f32 %v2883_v40, %v1274_v49  ;;  %v1276_v4 = vpop.f32.mrb[25].mxu0  ;;  %v1765_v24 = vadd.f32 %v2885_v43, %v1367_v16  ;;  %v1369_v46 = vpop.f32.mrb[25].mxu1 }
 0x190   :  { %v1764_v29 = vadd.f32 %v2887_v45, %v1276_v4  ;;  %v1278_v42 = vpop.f32.mrb[26].mxu0  ;;  %v1766_v32 = vadd.f32 %v2889_v48, %v1369_v46  ;;  %v1371_v37 = vpop.f32.mrb[26].mxu1 }
 0x191   :  { %v1855_v31 = vsub.f32 0.0, %v1763_v50  ;;  %v1771_v17 = vadd.f32 %v2883_v40, %v1278_v42  ;;  %v1280_v39 = vpop.f32.mrb[27].mxu0  ;;  %v1857_v49 = vsub.f32 0.0, %v1765_v24  ;;  %v1773_v58 = vadd.f32 %v2885_v43, %v1371_v37  ;;  %v1373_v4 = vpop.f32.mrb[27].mxu1 }
 0x192   :  { %v1856_v41 = vsub.f32 0.0, %v1764_v29  ;;  %v1772_v16 = vadd.f32 %v2887_v45, %v1280_v39  ;;  %v1858_v28 = vsub.f32 0.0, %v1766_v32  ;;  %v1774_v15 = vadd.f32 %v2889_v48, %v1373_v4 }
 0x193   :  { %v1903_v33 = vmul.f32 1.442695, %v1855_v31  ;;  %v1859_v27 = vsub.f32 0.0, %v1771_v17  ;;  %v1907_v23 = vmul.f32 1.442695, %v1857_v49  ;;  %v1861_v22 = vsub.f32 0.0, %v1773_v58 }
 0x194   :  { %v1905_v50 = vmul.f32 1.442695, %v1856_v41  ;;  %v1860_v46 = vsub.f32 0.0, %v1772_v16  ;;  %v1909_v42 = vmul.f32 1.442695, %v1858_v28  ;;  %v1862_v19 = vsub.f32 0.0, %v1774_v15 }
 0x195   :  { %2345 = vpow2.f32 %v1903_v33  ;;  %v1911_v21 = vmul.f32 1.442695, %v1859_v27  ;;  %v2905_v29 = vadd.f32 %v2855_v35, %v2772_v25  ;;  %v2909_v24 = vadd.f32 %v2857_v36, %v2774_v38 }
 0x196   :  { %2347 = vpow2.f32 %v1907_v23  ;;  %v1915_v31 = vmul.f32 1.442695, %v1861_v22  ;;  %v1284_v32 = vpop.f32.mrb[28].mxu0  ;;  %v2913_v41 = vadd.f32 %v2844_v26, %v2776_v47  ;;  %v1913_v33 = vmul.f32 1.442695, %v1860_v46  ;;  %v1377_v28 = vpop.f32.mrb[28].mxu1 }
 0x197   :  { %2349 = vpow2.f32 %v1905_v50  ;;  %v1779_v27 = vadd.f32 %v2883_v40, %v1284_v32  ;;  %v1286_v58 = vpop.f32.mrb[29].mxu0  ;;  %v1917_v25 = vmul.f32 1.442695, %v1862_v19  ;;  %v1781_v17 = vadd.f32 %v2885_v43, %v1377_v28  ;;  %v1379_v37 = vpop.f32.mrb[29].mxu1 }
 0x198   :  { %2351 = vpow2.f32 %v1909_v42  ;;  %v1780_v38 = vadd.f32 %v2887_v45, %v1286_v58  ;;  %v1288_v23 = vpop.f32.mrb[30].mxu0  ;;  %v1782_v39 = vadd.f32 %v2889_v48, %v1379_v37  ;;  %v1381_v49 = vpop.f32.mrb[30].mxu1  ;;  %v2922_v4 = vadd.f32 %v2853_v34, %v2778_v61 }
 0x199   :  { %2353 = vpow2.f32 %v1911_v21  ;;  %v1863_v22 = vsub.f32 0.0, %v1779_v27  ;;  %v1787_v47 = vadd.f32 %v2883_v40, %v1288_v23  ;;  %v1290_v16 = vpop.f32.mrb[31].mxu0  ;;  %v1865_v19 = vsub.f32 0.0, %v1781_v17  ;;  %v1383_v50 = vpop.f32.mrb[31].mxu1 }
 0x19a   :  { %2355 = vpow2.f32 %v1915_v31  ;;  %v1864_v15 = vsub.f32 0.0, %v1780_v38  ;;  %v1866_v42 = vsub.f32 0.0, %v1782_v39  ;;  %v2926_v21 = vadd.f32 %v2855_v35, %v2780_v6 }
 0x19b   :  { %2357 = vpow2.f32 %v1913_v33  ;;  %v1919_v46 = vmul.f32 1.442695, %v1863_v22  ;;  %v1867_v32 = vsub.f32 0.0, %v1787_v47  ;;  %v1923_v27 = vmul.f32 1.442695, %v1865_v19 }
 0x19c   :  { %2359 = vpow2.f32 %v1917_v25  ;;  %v1921_v28 = vmul.f32 1.442695, %v1864_v15  ;;  %v2930_v58 = vadd.f32 %v2857_v36, %v2782_v20  ;;  %v1925_v61 = vmul.f32 1.442695, %v1866_v42 }
 0x19d   :  { %2361 = vpow2.f32 %v1919_v46  ;;  %v1927_v31 = vmul.f32 1.442695, %v1867_v32  ;;  %v2934_v33 = vadd.f32 %v2844_v26, %v2784_v30  ;;  %v2938_v17 = vadd.f32 %v2853_v34, %v2786_v44 }
 0x19e   :  { %2363 = vpow2.f32 %v1923_v27  ;;  %v1789_v6 = vadd.f32 %v2885_v43, %v1381_v49  ;;  %v1294_v25 = vpop.f32.mrb[32].mxu0  ;;  %v2943_v20 = vadd.f32 %v2855_v35, %v2788_v51  ;;  %v2947_v37 = vadd.f32 %v2857_v36, %v2790_v52  ;;  %v1387_v23 = vpop.f32.mrb[32].mxu1 }
 0x19f   :  { %v2346_v38 = vpop.eup %2345  ;;  %2365 = vpow2.f32 %v1921_v28  ;;  %v1788_v30 = vadd.f32 %v2887_v45, %v1290_v16  ;;  %v1296_v22 = vpop.f32.mrb[33].mxu0  ;;  %v2952_v39 = vadd.f32 %v2844_v26, %v2792_v53  ;;  %v1790_v49 = vadd.f32 %v2889_v48, %v1383_v50 }
 0x1a0   :  { %v2348_v44 = vpop.eup %2347  ;;  %v1999_v47 = vadd.f32 1.0, %v2346_v38  ;;  %2367 = vpow2.f32 %v1925_v61  ;;  %v1389_v51 = vpop.f32.mrb[33].mxu1  ;;  %v2957_v52 = vadd.f32 %v2853_v34, %v2794_v54  ;;  %v1795_v16 = vadd.f32 %v2883_v40, %v1294_v25 }
 0x1a1   :  { %v1298_v19 = vpop.f32.mrb[34].mxu0  ;;  %v2350_v15 = vpop.eup %2349  ;;  %v2001_v46 = vadd.f32 1.0, %v2348_v44  ;;  %2369 = vpow2.f32 %v1927_v31  ;;  %v2964_v27 = vadd.f32 %v2855_v35, %v2796_v55  ;;  %v1869_v28 = vsub.f32 0.0, %v1789_v6 }
 0x1a2   :  { %v1391_v42 = vpop.f32.mrb[34].mxu1  ;;  %v2960_v32 = vpop.f32.mrb[35].mxu0  ;;  %2371 = vrcp.f32 %v1999_v47  ;;  %v2000_v50 = vadd.f32 1.0, %v2350_v15  ;;  %v1868_v18 = vsub.f32 0.0, %v1788_v30  ;;  %v1797_v31 = vadd.f32 %v2885_v43, %v1387_v23 }
 0x1a3   :  { %v2352_v53 = vpop.eup %2351  ;;  %v1393_v61 = vpop.f32.mrb[35].mxu1  ;;  %2373 = vrcp.f32 %v2001_v46  ;;  %v2969_v25 = vadd.f32 %v2857_v36, %v2798_v56  ;;  %v1870_v13 = vsub.f32 0.0, %v1790_v49  ;;  %v2973_v47 = vadd.f32 %v2844_v26, %v2800_v57 }
 0x1a4   :  { %v2354_v38 = vpop.eup %2353  ;;  %v2002_v54 = vadd.f32 1.0, %v2352_v53  ;;  %2375 = vrcp.f32 %v2000_v50  ;;  %v1871_v15 = vsub.f32 0.0, %v1795_v16  ;;  %v1931_v23 = vmul.f32 1.442695, %v1869_v28 }
 0x1a5   :  { %v2356_v44 = vpop.eup %2355  ;;  %v2003_v14 = vadd.f32 1.0, %v2354_v38  ;;  %v1796_v53 = vadd.f32 %v2887_v45, %v1296_v22  ;;  %v1929_v38 = vmul.f32 1.442695, %v1868_v18  ;;  %v1873_v49 = vsub.f32 0.0, %v1797_v31 }
 0x1a6   :  { %v2358_v55 = vpop.eup %2357  ;;  %2377 = vrcp.f32 %v2002_v54  ;;  %v2005_v6 = vadd.f32 1.0, %v2356_v44  ;;  %v1304_v12 = vpop.f32.mrb[36].mxu0  ;;  %v1933_v44 = vmul.f32 1.442695, %v1870_v13  ;;  %v1798_v16 = vadd.f32 %v2889_v48, %v1389_v51 }
 0x1a7   :  { %v2360_v46 = vpop.eup %2359  ;;  %2379 = vrcp.f32 %v2003_v14  ;;  %v2004_v30 = vadd.f32 1.0, %v2358_v55  ;;  %v1397_v10 = vpop.f32.mrb[36].mxu1  ;;  %v2985_v55 = vadd.f32 %v2853_v34, %v2802_v59  ;;  %v1935_v31 = vmul.f32 1.442695, %v1871_v15 }
 0x1a8   :  { %v2362_v56 = vpop.eup %2361  ;;  %2381 = vrcp.f32 %v2005_v6  ;;  %v2006_v50 = vadd.f32 1.0, %v2360_v46  ;;  %v2976_v9 = vpop.f32.mrb[37].mxu0  ;;  %v1872_v51 = vsub.f32 0.0, %v1796_v53  ;;  %v1939_v59 = vmul.f32 1.442695, %v1873_v49 }
 0x1a9   :  { %v2364_v57 = vpop.eup %2363  ;;  %2383 = vrcp.f32 %v2004_v30  ;;  %v2007_v54 = vadd.f32 1.0, %v2362_v56  ;;  %v2979_v14 = vpop.f32.mrb[37].mxu1  ;;  %3238 = vst [vmem:[#allocation38_spill] sm:$0xff] %v2985_v55  ;;  %v1803_v56 = vadd.f32 %v2883_v40, %v1298_v19  ;;  %v1874_v3 = vsub.f32 0.0, %v1798_v16 }
 0x1aa   :  { %v2981_v28 = vpop.f32.mrb[38].mxu0  ;;  %v2366_v22 = vpop.eup %2365  ;;  %2385 = vrcp.f32 %v2006_v50  ;;  %v2009_v18 = vadd.f32 1.0, %v2364_v57  ;;  %v1805_v50 = vadd.f32 %v2885_v43, %v1391_v42  ;;  %v1804_v55 = vadd.f32 %v2887_v45, %v2960_v32 }
 0x1ab   :  { %v2987_v6 = vpop.f32.mrb[38].mxu1  ;;  %v2989_v46 = vpop.f32.mrb[39].mxu0  ;;  %2387 = vrcp.f32 %v2007_v54  ;;  %v2008_v13 = vadd.f32 1.0, %v2366_v22  ;;  %v1806_v19 = vadd.f32 %v2889_v48, %v1393_v61  ;;  %v1811_v22 = vadd.f32 %v2883_v40, %v1304_v12 }
 0x1ac   :  { %v2368_v30 = vpop.eup %2367  ;;  %v2992_v8 = vpop.f32.mrb[39].mxu1  ;;  %2389 = vrcp.f32 %v2009_v18  ;;  %v1937_v42 = vmul.f32 1.442695, %v1872_v51  ;;  %v1877_v16 = vsub.f32 0.0, %v1805_v50  ;;  %v1941_v51 = vmul.f32 1.442695, %v1874_v3 }
 0x1ad   :  { %v2370_v7 = vpop.eup %2369  ;;  %v2010_v5 = vadd.f32 1.0, %v2368_v30  ;;  %2391 = vrcp.f32 %v2008_v13  ;;  %v1875_v30 = vsub.f32 0.0, %v1803_v56  ;;  %v1876_v56 = vsub.f32 0.0, %v1804_v55 }
 0x1ae   :  { %v2372_v57 = vpop.eup %2371  ;;  %v2011_v15 = vadd.f32 1.0, %v2370_v7  ;;  %v3001_v13 = vpop.f32.mrb[40].mxu0  ;;  %v1879_v50 = vsub.f32 0.0, %v1811_v22  ;;  %v3021_v3 = vadd.f32 %v2855_v35, %v2804_v60 }
 0x1af   :  { %v2374_v54 = vpop.eup %2373  ;;  %v2095_v53 = vmul.f32 %v2372_v57, %v2896_v11  ;;  %2393 = vrcp.f32 %v2010_v5  ;;  %v1813_v5 = vadd.f32 %v2885_v43, %v1397_v10  ;;  %v3005_v11 = vpop.f32.mrb[40].mxu1  ;;  %v1878_v10 = vsub.f32 0.0, %v1806_v19 }
 0x1b0   :  { %v2376_v18 = vpop.eup %2375  ;;  %v2097_v49 = vmul.f32 %v2374_v54, %v2905_v29  ;;  %2395 = vrcp.f32 %v2011_v15  ;;  %v3007_v61 = vpop.f32.mrb[41].mxu0  ;;  %v1947_v19 = vmul.f32 1.442695, %v1877_v16 }
 0x1b1   :  { %v2378_v7 = vpop.eup %2377  ;;  %2143 = vst [vmem:[#allocation9] sm:$0xff] %v2095_v53  ;;  %v2096_v32 = vmul.f32 %v2376_v18, %v2909_v24  ;;  %2397 = vpow2.f32 %v1931_v23  ;;  %v3010_v57 = vpop.f32.mrb[41].mxu1  ;;  %v1881_v22 = vsub.f32 0.0, %v1813_v5 }
 0x1b2   :  { %v2380_v12 = vpop.eup %2379  ;;  %2145 = vst [vmem:[#allocation9 + $0x10] sm:$0xff] %v2097_v49  ;;  %v2098_v29 = vmul.f32 %v2378_v7, %v2913_v41  ;;  %2399 = vpow2.f32 %v1929_v38  ;;  %v3012_v15 = vpop.f32.mrb[42].mxu0  ;;  %v1943_v38 = vmul.f32 1.442695, %v1875_v30  ;;  %v3029_v7 = vadd.f32 %v2857_v36, %v2806_v62 }
 0x1b3   :  { %v2382_v24 = vpop.eup %2381  ;;  %2144 = vst [vmem:[#allocation9 + $0x8] sm:$0xff] %v2096_v32  ;;  %v2099_v23 = vmul.f32 %v2380_v12, %v2922_v4  ;;  %2401 = vpow2.f32 %v1933_v44  ;;  %v3015_v54 = vpop.f32.mrb[42].mxu1  ;;  %v1949_v32 = vmul.f32 1.442695, %v1878_v10  ;;  %v1812_v62 = vadd.f32 %v2887_v45, %v2976_v9 }
 0x1b4   :  { %v3017_v53 = vpop.f32.mrb[43].mxu0  ;;  %v2384_v18 = vpop.eup %2383  ;;  %2146 = vst [vmem:[#allocation9 + $0x18] sm:$0xff] %v2098_v29  ;;  %v2101_v41 = vmul.f32 %v2382_v24, %v2926_v21  ;;  %2403 = vpow2.f32 %v1935_v31  ;;  %v1945_v21 = vmul.f32 1.442695, %v1876_v56  ;;  %v1955_v12 = vmul.f32 1.442695, %v1881_v22 }
 0x1b5   :  { %v3024_v55 = vpop.f32.mrb[43].mxu1  ;;  %v2386_v4 = vpop.eup %2385  ;;  %2147 = vst [vmem:[#allocation9 + $0x20] sm:$0xff] %v2099_v23  ;;  %v2100_v44 = vmul.f32 %v2384_v18, %v2930_v58  ;;  %2405 = vpow2.f32 %v1939_v59  ;;  %v1951_v58 = vmul.f32 1.442695, %v1879_v50  ;;  %v1819_v29 = vadd.f32 %v2883_v40, %v2981_v28 }
 0x1b6   :  { %v2388_v49 = vpop.eup %2387  ;;  %2149 = vst [vmem:[#allocation9 + $0x30] sm:$0xff] %v2101_v41  ;;  %v2102_v60 = vmul.f32 %v2386_v4, %v2934_v33  ;;  %2407 = vpow2.f32 %v1937_v42  ;;  %v1814_v33 = vadd.f32 %v2889_v48, %v2979_v14  ;;  %v3038_v42 = vpop.f32.mrb[44].mxu0  ;;  %v3049_v9 = vadd.f32 %v2844_v26, %v2808_v63 }
 0x1b7   :  { %v2390_v31 = vpop.eup %2389  ;;  %2148 = vst [vmem:[#allocation9 + $0x28] sm:$0xff] %v2100_v44  ;;  %v2103_v30 = vmul.f32 %v2388_v49, %v2938_v17  ;;  %2409 = vpow2.f32 %v1941_v51  ;;  %v3043_v51 = vpop.f32.mrb[44].mxu1  ;;  %v3060_v10 = vadd.f32 %v2853_v34, %v2810_v0  ;;  %v3064_v63 = vadd.f32 %v2855_v35, %v2812_v1 }
 0x1b8   :  { %v2392_v59 = vpop.eup %2391  ;;  %2150 = vst [vmem:[#allocation9 + $0x38] sm:$0xff] %v2102_v60  ;;  %v2105_v16 = vmul.f32 %v2390_v31, %v2943_v20  ;;  %2411 = vpow2.f32 %v1943_v38  ;;  %v3045_v20 = vpop.f32.mrb[45].mxu0  ;;  %v1880_v38 = vsub.f32 0.0, %v1812_v62  ;;  %v1882_v4 = vsub.f32 0.0, %v1814_v33 }
 0x1b9   :  { %v2394_v5 = vpop.eup %2393  ;;  %2151 = vst [vmem:[#allocation9 + $0x40] sm:$0xff] %v2103_v30  ;;  %v2104_v17 = vmul.f32 %v2392_v59, %v2947_v37  ;;  %2413 = vpow2.f32 %v1947_v19  ;;  %v1821_v37 = vadd.f32 %v2885_v43, %v2987_v6  ;;  %v3054_v24 = vpop.f32.mrb[45].mxu1  ;;  %v1883_v19 = vsub.f32 0.0, %v1819_v29 }
 0x1ba   :  { %v2396_v56 = vpop.eup %2395  ;;  %2153 = vst [vmem:[#allocation9 + $0x50] sm:$0xff] %v2105_v16  ;;  %v2106_v14 = vmul.f32 %v2394_v5, %v2952_v39  ;;  %2415 = vpow2.f32 %v1945_v21  ;;  %v3056_v23 = vpop.f32.mrb[46].mxu0  ;;  %v1822_v21 = vadd.f32 %v2889_v48, %v2992_v8  ;;  %v3079_v30 = vadd.f32 %v2857_v36, %v2814_v2 }
 0x1bb   :  { %v2398_v28 = vpop.eup %2397  ;;  %2152 = vst [vmem:[#allocation9 + $0x48] sm:$0xff] %v2104_v17  ;;  %v2107_v39 = vmul.f32 %v2396_v56, %v2957_v52  ;;  %2417 = vpow2.f32 %v1949_v32  ;;  %v3067_v50 = vpop.f32.mrb[46].mxu1  ;;  %v1820_v52 = vadd.f32 %v2887_v45, %v2989_v46  ;;  %v1885_v60 = vsub.f32 0.0, %v1821_v37 }
 0x1bc   :  { %v3069_v6 = vpop.f32.mrb[47].mxu0  ;;  %v2400_v18 = vpop.eup %2399  ;;  %2154 = vst [vmem:[#allocation9 + $0x58] sm:$0xff] %v2106_v14  ;;  %v2013_v41 = vadd.f32 1.0, %v2398_v28  ;;  %2419 = vpow2.f32 %v1951_v58  ;;  %v1827_v58 = vadd.f32 %v2883_v40, %v3001_v13  ;;  %v1953_v16 = vmul.f32 1.442695, %v1880_v38 }
 0x1bd   :  { %v3071_v0 = vpop.f32.mrb[47].mxu1  ;;  %v2402_v44 = vpop.eup %2401  ;;  %2155 = vst [vmem:[#allocation9 + $0x60] sm:$0xff] %v2107_v39  ;;  %v2012_v1 = vadd.f32 1.0, %v2400_v18  ;;  %2421 = vpow2.f32 %v1955_v12  ;;  %v1957_v62 = vmul.f32 1.442695, %v1882_v4  ;;  %v1884_v8 = vsub.f32 0.0, %v1820_v52 }
 0x1be   :  { %v2404_v22 = vpop.eup %2403  ;;  %2423 = vrcp.f32 %v2013_v41  ;;  %v2014_v49 = vadd.f32 1.0, %v2402_v44  ;;  %v1959_v17 = vmul.f32 1.442695, %v1883_v19  ;;  %v3083_v2 = vmul.f32 1.442695, %v1885_v60 }
 0x1bf   :  { %v2406_v31 = vpop.eup %2405  ;;  %2425 = vrcp.f32 %v2012_v1  ;;  %v2015_v32 = vadd.f32 1.0, %v2404_v22  ;;  %v1886_v56 = vsub.f32 0.0, %v1822_v21  ;;  %v1887_v13 = vsub.f32 0.0, %v1827_v58 }
 0x1c0   :  { %v2408_v59 = vpop.eup %2407  ;;  %2427 = vrcp.f32 %v2014_v49  ;;  %v2017_v46 = vadd.f32 1.0, %v2406_v31  ;;  %v1829_v28 = vadd.f32 %v2885_v43, %v3005_v11  ;;  %v1828_v41 = vadd.f32 %v2887_v45, %v3007_v61 }
 0x1c1   :  { %v2410_v33 = vpop.eup %2409  ;;  %2429 = vrcp.f32 %v2015_v32  ;;  %v2016_v5 = vadd.f32 1.0, %v2408_v59  ;;  %v3091_v38 = vadd.f32 %v2889_v48, %v3024_v55  ;;  %v1961_v1 = vmul.f32 1.442695, %v1884_v8 }
 0x1c2   :  { %v2412_v12 = vpop.eup %2411  ;;  %2431 = vrcp.f32 %v2017_v46  ;;  %v2018_v29 = vadd.f32 1.0, %v2410_v33  ;;  %v3095_v19 = vadd.f32 %v2883_v40, %v3038_v42  ;;  %v1965_v22 = vmul.f32 1.442695, %v1886_v56  ;;  %v3239_v56 = vld [vmem:[#allocation38_spill] sm:$0xff] }
 0x1c3   :  { %v2414_v14 = vpop.eup %2413  ;;  %2433 = vrcp.f32 %v2016_v5  ;;  %v2019_v37 = vadd.f32 1.0, %v2412_v12  ;;  %v3099_v49 = vadd.f32 %v2885_v43, %v3043_v51  ;;  %v1967_v60 = vmul.f32 1.442695, %v1887_v13 }
 0x1c4   :  { %v2416_v39 = vpop.eup %2415  ;;  %2435 = vrcp.f32 %v2018_v29  ;;  %v2021_v18 = vadd.f32 1.0, %v2414_v14  ;;  %v1889_v21 = vsub.f32 0.0, %v1829_v28  ;;  %v1888_v58 = vsub.f32 0.0, %v1828_v41  ;;  %v3240_v41 = vld [vmem:[#allocation13_spill] sm:$0xff] }
 0x1c5   :  { %v2418_v4 = vpop.eup %2417  ;;  %2437 = vrcp.f32 %v2019_v37  ;;  %v2020_v44 = vadd.f32 1.0, %v2416_v39  ;;  %v1830_v42 = vadd.f32 %v2889_v48, %v3010_v57  ;;  %v1835_v51 = vadd.f32 %v2883_v40, %v3012_v15 }
 0x1c6   :  { %v2420_v52 = vpop.eup %2419  ;;  %2439 = vrcp.f32 %v2021_v18  ;;  %v2022_v11 = vadd.f32 1.0, %v2418_v4  ;;  %v3108_v33 = vadd.f32 %v2887_v45, %v3045_v20  ;;  %v1837_v12 = vadd.f32 %v2885_v43, %v3015_v54 }
 0x1c7   :  { %v2422_v61 = vpop.eup %2421  ;;  %2441 = vrcp.f32 %v2020_v44  ;;  %v2023_v55 = vadd.f32 1.0, %v2420_v52  ;;  %v3115_v57 = vadd.f32 %v2889_v48, %v3054_v24  ;;  %v1836_v15 = vadd.f32 %v2887_v45, %v3017_v53  ;;  %v3241_v44 = vld [vmem:[#allocation14_spill] sm:$0xff] }
 0x1c8   :  { %v2424_v31 = vpop.eup %2423  ;;  %2443 = vrcp.f32 %v2022_v11  ;;  %v2025_v32 = vadd.f32 1.0, %v2422_v61  ;;  %v3122_v20 = vadd.f32 %v2883_v40, %v3056_v23  ;;  %v1890_v14 = vsub.f32 0.0, %v1830_v42 }
 0x1c9   :  { %v2426_v59 = vpop.eup %2425  ;;  %v2109_v46 = vmul.f32 %v2424_v31, %v2964_v27  ;;  %2445 = vrcp.f32 %v2023_v55  ;;  %v3127_v24 = vadd.f32 %v2885_v43, %v3067_v50  ;;  %v1971_v53 = vmul.f32 1.442695, %v1889_v21 }
 0x1ca   :  { %v2428_v5 = vpop.eup %2427  ;;  %v2108_v8 = vmul.f32 %v2426_v59, %v2969_v25  ;;  %2447 = vrcp.f32 %v2025_v32  ;;  %v1969_v23 = vmul.f32 1.442695, %v1888_v58  ;;  %v1892_v50 = vsub.f32 0.0, %v1836_v15  ;;  %v3243_v15 = vld [vmem:[#allocation16_spill] sm:$0xff] }
 0x1cb   :  { %v2430_v27 = vpop.eup %2429  ;;  %2157 = vst [vmem:[#allocation9 + $0x70] sm:$0xff] %v2109_v46  ;;  %v2110_v29 = vmul.f32 %v2428_v5, %v2973_v47  ;;  %2449 = vpow2.f32 %v1953_v16  ;;  %v1891_v16 = vsub.f32 0.0, %v1835_v51 }
 0x1cc   :  { %v2432_v25 = vpop.eup %2431  ;;  %2156 = vst [vmem:[#allocation9 + $0x68] sm:$0xff] %v2108_v8  ;;  %v2111_v54 = vmul.f32 %v2430_v27, %v3239_v56  ;;  %2451 = vpow2.f32 %v1957_v62  ;;  %v1893_v62 = vsub.f32 0.0, %v1837_v12  ;;  %v1977_v61 = vmul.f32 1.442695, %v1892_v50 }
 0x1cd   :  { %v2434_v37 = vpop.eup %2433  ;;  %2158 = vst [vmem:[#allocation9 + $0x78] sm:$0xff] %v2110_v29  ;;  %v2113_v47 = vmul.f32 %v2432_v25, %v3021_v3  ;;  %2453 = vpow2.f32 %v1959_v17  ;;  %v3135_v3 = vadd.f32 %v2887_v45, %v3069_v6  ;;  %v1975_v45 = vmul.f32 1.442695, %v1891_v16 }
 0x1ce   :  { %v2436_v13 = vpop.eup %2435  ;;  %2159 = vst [vmem:[#allocation9 + $0x80] sm:$0xff] %v2111_v54  ;;  %v2112_v40 = vmul.f32 %v2434_v37, %v3029_v7  ;;  %2455 = vpow2.f32 %v3083_v2  ;;  %v1973_v7 = vmul.f32 1.442695, %v1890_v14  ;;  %v3140_v2 = vadd.f32 %v2889_v48, %v3071_v0  ;;  %v3242_v0 = vld [vmem:[#allocation15_spill] sm:$0xff]  ;;  %v3244_v14 = vld [vmem:[#allocation17_spill] sm:$0xff] }
 0x1cf   :  { %v2438_v28 = vpop.eup %2437  ;;  %2161 = vst [vmem:[#allocation9 + $0x90] sm:$0xff] %v2113_v47  ;;  %v2114_v43 = vmul.f32 %v2436_v13, %v3049_v9  ;;  %2457 = vpow2.f32 %v1961_v1  ;;  %v1802_v9 = vadd.f32 %v2844_v26, %v3240_v41  ;;  %v1807_v1 = vadd.f32 %v2853_v34, %v3241_v44  ;;  %v3245_v13 = vld [vmem:[#allocation18_spill] sm:$0xff] }
 0x1d0   :  { %v2440_v17 = vpop.eup %2439  ;;  %2160 = vst [vmem:[#allocation9 + $0x88] sm:$0xff] %v2112_v40  ;;  %v2115_v39 = vmul.f32 %v2438_v28, %v3060_v10  ;;  %2459 = vpow2.f32 %v1965_v22  ;;  %v1979_v52 = vmul.f32 1.442695, %v1893_v62  ;;  %v1809_v11 = vadd.f32 %v2855_v35, %v3242_v0 }
 0x1d1   :  { %v2442_v18 = vpop.eup %2441  ;;  %2162 = vst [vmem:[#allocation9 + $0x98] sm:$0xff] %v2114_v43  ;;  %v2117_v4 = vmul.f32 %v2440_v17, %v3064_v63  ;;  %2461 = vpow2.f32 %v1967_v60  ;;  %v1808_v25 = vadd.f32 %v2857_v36, %v3243_v15  ;;  %v1810_v37 = vadd.f32 %v2844_v26, %v3244_v14  ;;  %v3246_v43 = vld [vmem:[#allocation19_spill] sm:$0xff]  ;;  %v3252_v14 = vld [vmem:[#allocation25_spill] sm:$0xff] }
 0x1d2   :  { %v2444_v6 = vpop.eup %2443  ;;  %2163 = vst [vmem:[#allocation9 + $0xa0] sm:$0xff] %v2115_v39  ;;  %v2116_v10 = vmul.f32 %v2442_v18, %v3079_v30  ;;  %2463 = vpow2.f32 %v1971_v53  ;;  %v1894_v53 = vsub.f32 0.0, %v3091_v38  ;;  %v1815_v40 = vadd.f32 %v2853_v34, %v3245_v13  ;;  %v3247_v18 = vld [vmem:[#allocation20_spill] sm:$0xff] }
 0x1d3   :  { %v2446_v48 = vpop.eup %2445  ;;  %2165 = vst [vmem:[#allocation9 + $0xb0] sm:$0xff] %v2117_v4  ;;  %v2118_v22 = vmul.f32 %v2444_v6, %v1802_v9  ;;  %2465 = vpow2.f32 %v1969_v23  ;;  %v1895_v62 = vsub.f32 0.0, %v3095_v19  ;;  %v1817_v50 = vadd.f32 %v2855_v35, %v3246_v43 }
 0x1d4   :  { %v2448_v63 = vpop.eup %2447  ;;  %2164 = vst [vmem:[#allocation9 + $0xa8] sm:$0xff] %v2116_v10  ;;  %v2119_v55 = vmul.f32 %v2446_v48, %v1807_v1  ;;  %2467 = vpow2.f32 %v1973_v7  ;;  %v1897_v39 = vsub.f32 0.0, %v3099_v49  ;;  %v1816_v38 = vadd.f32 %v2857_v36, %v3247_v18 }
 0x1d5   :  { %v2450_v60 = vpop.eup %2449  ;;  %2166 = vst [vmem:[#allocation9 + $0xb8] sm:$0xff] %v2118_v22  ;;  %v2121_v21 = vmul.f32 %v2448_v63, %v1809_v11  ;;  %2469 = vpow2.f32 %v1975_v45  ;;  %v1896_v9 = vsub.f32 0.0, %v3108_v33  ;;  %v1981_v19 = vmul.f32 1.442695, %v1894_v53 }
 0x1d6   :  { %v2452_v31 = vpop.eup %2451  ;;  %2167 = vst [vmem:[#allocation9 + $0xc0] sm:$0xff] %v2119_v55  ;;  %v2024_v30 = vadd.f32 1.0, %v2450_v60  ;;  %2471 = vpow2.f32 %v1979_v52  ;;  %v1898_v6 = vsub.f32 0.0, %v3115_v57  ;;  %v1983_v10 = vmul.f32 1.442695, %v1895_v62  ;;  %v3254_v62 = vld [vmem:[#allocation27_spill] sm:$0xff] }
 0x1d7   :  { %v2454_v32 = vpop.eup %2453  ;;  %2169 = vst [vmem:[#allocation9 + $0xd0] sm:$0xff] %v2121_v21  ;;  %v2026_v58 = vadd.f32 1.0, %v2452_v31  ;;  %2473 = vpow2.f32 %v1977_v61  ;;  %v1899_v49 = vsub.f32 0.0, %v3122_v20  ;;  %v1987_v0 = vmul.f32 1.442695, %v1897_v39  ;;  %v3248_v31 = vld [vmem:[#allocation21_spill] sm:$0xff] }
 0x1d8   :  { %v2456_v42 = vpop.eup %2455  ;;  %2475 = vrcp.f32 %v2024_v30  ;;  %v2027_v59 = vadd.f32 1.0, %v2454_v32  ;;  %v1901_v11 = vsub.f32 0.0, %v3127_v24  ;;  %v1985_v61 = vmul.f32 1.442695, %v1896_v9 }
 0x1d9   :  { %v2458_v46 = vpop.eup %2457  ;;  %2477 = vrcp.f32 %v2026_v58  ;;  %v2029_v51 = vadd.f32 1.0, %v2456_v42  ;;  %v1900_v63 = vsub.f32 0.0, %v3135_v3  ;;  %v1989_v60 = vmul.f32 1.442695, %v1898_v6  ;;  %v3249_v42 = vld [vmem:[#allocation22_spill] sm:$0xff] }
 0x1da   :  { %v2460_v5 = vpop.eup %2459  ;;  %2479 = vrcp.f32 %v2027_v59  ;;  %v2028_v8 = vadd.f32 1.0, %v2458_v46  ;;  %v1902_v21 = vsub.f32 0.0, %v3140_v2  ;;  %v1818_v30 = vadd.f32 %v2844_v26, %v3248_v31  ;;  %v3258_v31 = vld [vmem:[#allocation31_spill] sm:$0xff] }
 0x1db   :  { %v2462_v12 = vpop.eup %2461  ;;  %2481 = vrcp.f32 %v2029_v51  ;;  %v2030_v27 = vadd.f32 1.0, %v2460_v5  ;;  %v1991_v24 = vmul.f32 1.442695, %v1899_v49  ;;  %v1823_v59 = vadd.f32 %v2853_v34, %v3249_v42  ;;  %v3250_v5 = vld [vmem:[#allocation23_spill] sm:$0xff] }
 0x1dc   :  { %v2464_v29 = vpop.eup %2463  ;;  %2483 = vrcp.f32 %v2028_v8  ;;  %v2031_v56 = vadd.f32 1.0, %v2462_v12  ;;  %v1995_v46 = vmul.f32 1.442695, %v1901_v11  ;;  %v1825_v2 = vadd.f32 %v2855_v35, %v3250_v5 }
 0x1dd   :  { %v2466_v54 = vpop.eup %2465  ;;  %2485 = vrcp.f32 %v2030_v27  ;;  %v2033_v47 = vadd.f32 1.0, %v2464_v29  ;;  %v1993_v12 = vmul.f32 1.442695, %v1900_v63  ;;  %v3251_v29 = vld [vmem:[#allocation24_spill] sm:$0xff]  ;;  %v3256_v63 = vld [vmem:[#allocation29_spill] sm:$0xff] }
 0x1de   :  { %v2468_v16 = vpop.eup %2467  ;;  %2487 = vrcp.f32 %v2031_v56  ;;  %v2032_v23 = vadd.f32 1.0, %v2466_v54  ;;  %v1824_v15 = vadd.f32 %v2857_v36, %v3251_v29  ;;  %v1997_v56 = vmul.f32 1.442695, %v1902_v21  ;;  %v3263_v29 = vld [vmem:[#allocation36_spill] sm:$0xff] }
 0x1df   :  { %v2470_v28 = vpop.eup %2469  ;;  %2489 = vrcp.f32 %v2033_v47  ;;  %v2034_v17 = vadd.f32 1.0, %v2468_v16  ;;  %v3253_v16 = vld [vmem:[#allocation26_spill] sm:$0xff] }
 0x1e0   :  { %v2472_v7 = vpop.eup %2471  ;;  %2491 = vrcp.f32 %v2032_v23  ;;  %v2035_v41 = vadd.f32 1.0, %v2470_v28  ;;  %v1831_v13 = vadd.f32 %v2853_v34, %v3253_v16  ;;  %v1833_v28 = vadd.f32 %v2855_v35, %v3254_v62 }
 0x1e1   :  { %v2474_v4 = vpop.eup %2473  ;;  %2493 = vrcp.f32 %v2034_v17  ;;  %v2037_v45 = vadd.f32 1.0, %v2472_v7  ;;  %v3255_v17 = vld [vmem:[#allocation28_spill] sm:$0xff] }
 0x1e2   :  { %v2476_v44 = vpop.eup %2475  ;;  %2495 = vrcp.f32 %v2035_v41  ;;  %v2036_v1 = vadd.f32 1.0, %v2474_v4 }
 0x1e3   :  { %v2478_v52 = vpop.eup %2477  ;;  %v2120_v48 = vmul.f32 %v2476_v44, %v1808_v25  ;;  %2497 = vrcp.f32 %v2037_v45 }
 0x1e4   :  { %v2480_v22 = vpop.eup %2479  ;;  %v2122_v33 = vmul.f32 %v2478_v52, %v1810_v37  ;;  %2499 = vrcp.f32 %v2036_v1  ;;  %v1826_v37 = vadd.f32 %v2844_v26, %v3252_v14  ;;  %v1832_v26 = vadd.f32 %v2857_v36, %v3255_v17 }
 0x1e5   :  { %v2482_v55 = vpop.eup %2481  ;;  %2168 = vst [vmem:[#allocation9 + $0xc8] sm:$0xff] %v2120_v48  ;;  %v2123_v57 = vmul.f32 %v2480_v22, %v1815_v40  ;;  %2501 = vpow2.f32 %v1981_v19 }
 0x1e6   :  { %v2484_v20 = vpop.eup %2483  ;;  %2170 = vst [vmem:[#allocation9 + $0xd8] sm:$0xff] %v2122_v33  ;;  %v2125_v32 = vmul.f32 %v2482_v55, %v1817_v50  ;;  %2503 = vpow2.f32 %v1983_v10 }
 0x1e7   :  { %v2486_v58 = vpop.eup %2485  ;;  %2171 = vst [vmem:[#allocation9 + $0xe0] sm:$0xff] %v2123_v57  ;;  %v2124_v3 = vmul.f32 %v2484_v20, %v1816_v38  ;;  %2505 = vpow2.f32 %v1987_v0 }
 0x1e8   :  { %v2488_v51 = vpop.eup %2487  ;;  %2173 = vst [vmem:[#allocation9 + $0xf0] sm:$0xff] %v2125_v32  ;;  %v2126_v8 = vmul.f32 %v2486_v58, %v1818_v30  ;;  %2507 = vpow2.f32 %v1985_v61 }
 0x1e9   :  { %v2490_v27 = vpop.eup %2489  ;;  %2172 = vst [vmem:[#allocation9 + $0xe8] sm:$0xff] %v2124_v3  ;;  %v2127_v25 = vmul.f32 %v2488_v51, %v1823_v59  ;;  %2509 = vpow2.f32 %v1989_v60  ;;  %v3257_v60 = vld [vmem:[#allocation30_spill] sm:$0xff]  ;;  %v3260_v59 = vld [vmem:[#allocation33_spill] sm:$0xff] }
 0x1ea   :  { %v2492_v54 = vpop.eup %2491  ;;  %2174 = vst [vmem:[#allocation9 + $0xf8] sm:$0xff] %v2126_v8  ;;  %v2129_v47 = vmul.f32 %v2490_v27, %v1825_v2  ;;  %2511 = vpow2.f32 %v1991_v24  ;;  %v3259_v24 = vld [vmem:[#allocation32_spill] sm:$0xff]  ;;  %v3261_v51 = vld [vmem:[#allocation34_spill] sm:$0xff]  ;;  %v3262_v8 = vld [vmem:[#allocation35_spill] sm:$0xff] }
 0x1eb   :  { %v2494_v53 = vpop.eup %2493  ;;  %2175 = vst [vmem:[#allocation9 + $0x100] sm:$0xff] %v2127_v25  ;;  %v2128_v40 = vmul.f32 %v2492_v54, %v1824_v15  ;;  %2513 = vpow2.f32 %v1995_v46  ;;  %v3264_v25 = vld [vmem:[#allocation37_spill] sm:$0xff] }
 0x1ec   :  { %v2496_v23 = vpop.eup %2495  ;;  %2177 = vst [vmem:[#allocation9 + $0x110] sm:$0xff] %v2129_v47  ;;  %v2130_v43 = vmul.f32 %v2494_v53, %v1826_v37  ;;  %2515 = vpow2.f32 %v1993_v12 }
 0x1ed   :  { %v2498_v50 = vpop.eup %2497  ;;  %2176 = vst [vmem:[#allocation9 + $0x108] sm:$0xff] %v2128_v40  ;;  %v2131_v39 = vmul.f32 %v2496_v23, %v1831_v13  ;;  %2517 = vpow2.f32 %v1997_v56 }
 0x1ee   :  { %v2500_v7 = vpop.eup %2499  ;;  %2178 = vst [vmem:[#allocation9 + $0x118] sm:$0xff] %v2130_v43  ;;  %v2133_v34 = vmul.f32 %v2498_v50, %v1833_v28 }
 0x1ef   :  { %v2502_v18 = vpop.eup %2501  ;;  %2179 = vst [vmem:[#allocation9 + $0x120] sm:$0xff] %v2131_v39  ;;  %v2132_v38 = vmul.f32 %v2500_v7, %v1832_v26 }
 0x1f0   :  { %v2504_v41 = vpop.eup %2503  ;;  %2181 = vst [vmem:[#allocation9 + $0x130] sm:$0xff] %v2133_v34  ;;  %v2038_v9 = vadd.f32 1.0, %v2502_v18 }
 0x1f1   :  { %v2506_v35 = vpop.eup %2505  ;;  %2180 = vst [vmem:[#allocation9 + $0x128] sm:$0xff] %v2132_v38  ;;  %v2039_v4 = vadd.f32 1.0, %v2504_v41 }
 0x1f2   :  { %v2508_v45 = vpop.eup %2507  ;;  %2519 = vrcp.f32 %v2038_v9  ;;  %v2041_v19 = vadd.f32 1.0, %v2506_v35 }
 0x1f3   :  { %v2510_v6 = vpop.eup %2509  ;;  %2521 = vrcp.f32 %v2039_v4  ;;  %v2040_v36 = vadd.f32 1.0, %v2508_v45 }
 0x1f4   :  { %v2512_v44 = vpop.eup %2511  ;;  %2523 = vrcp.f32 %v2041_v19  ;;  %v2042_v1 = vadd.f32 1.0, %v2510_v6 }
 0x1f5   :  { %v2514_v10 = vpop.eup %2513  ;;  %2525 = vrcp.f32 %v2040_v36  ;;  %v2043_v49 = vadd.f32 1.0, %v2512_v44 }
 0x1f6   :  { %v2516_v52 = vpop.eup %2515  ;;  %2527 = vrcp.f32 %v2042_v1  ;;  %v2045_v48 = vadd.f32 1.0, %v2514_v10 }
 0x1f7   :  { %v2518_v0 = vpop.eup %2517  ;;  %2529 = vrcp.f32 %v2043_v49  ;;  %v2044_v11 = vadd.f32 1.0, %v2516_v52 }
 0x1f8   :  { %2531 = vrcp.f32 %v2045_v48  ;;  %v2046_v22 = vadd.f32 1.0, %v2518_v0 }
 0x1f9   :  { %2533 = vrcp.f32 %v2044_v11 }
 0x1fa   :  { %2535 = vrcp.f32 %v2046_v22 }
 0x1fc   :  { %v2520_v33 = vpop.eup %2519 }
 0x1fd   :  { %v2522_v61 = vpop.eup %2521  ;;  %v2134_v55 = vmul.f32 %v2520_v33, %v3256_v63 }
 0x1fe   :  { %v2524_v57 = vpop.eup %2523  ;;  %v2135_v21 = vmul.f32 %v2522_v61, %v3257_v60 }
 0x1ff   :  { %v2526_v20 = vpop.eup %2525  ;;  %2182 = vst [vmem:[#allocation9 + $0x138] sm:$0xff] %v2134_v55  ;;  %v2137_v30 = vmul.f32 %v2524_v57, %v3258_v31 }
 0x200   :  { %v2528_v32 = vpop.eup %2527  ;;  %2183 = vst [vmem:[#allocation9 + $0x140] sm:$0xff] %v2135_v21  ;;  %v2136_v58 = vmul.f32 %v2526_v20, %v3259_v24 }
 0x201   :  { %v2530_v42 = vpop.eup %2529  ;;  %2185 = vst [vmem:[#allocation9 + $0x150] sm:$0xff] %v2137_v30  ;;  %v2138_v3 = vmul.f32 %v2528_v32, %v3260_v59 }
 0x202   :  { %v2532_v46 = vpop.eup %2531  ;;  %2184 = vst [vmem:[#allocation9 + $0x148] sm:$0xff] %v2136_v58  ;;  %v2139_v5 = vmul.f32 %v2530_v42, %v3261_v51 }
 0x203   :  { %v2534_v2 = vpop.eup %2533  ;;  %2186 = vst [vmem:[#allocation9 + $0x158] sm:$0xff] %v2138_v3  ;;  %v2141_v12 = vmul.f32 %v2532_v46, %v3262_v8 }
 0x204   :  { %v2536_v27 = vpop.eup %2535  ;;  %2187 = vst [vmem:[#allocation9 + $0x160] sm:$0xff] %v2139_v5  ;;  %v2140_v15 = vmul.f32 %v2534_v2, %v3263_v29 }
 0x205   :  { %2189 = vst [vmem:[#allocation9 + $0x170] sm:$0xff] %v2141_v12  ;;  %v2142_v56 = vmul.f32 %v2536_v27, %v3264_v25 }
 0x206   :  { %2188 = vst [vmem:[#allocation9 + $0x168] sm:$0xff] %v2140_v15 }
 0x207   :  { %2190 = vst [vmem:[#allocation9 + $0x178] sm:$0xff] %v2142_v56 }
 0x208   :  { %2614 = shalt.err (!%p2611_p0)
}
 0x209   :  { %s2615_s29 = scalar_lea.hbm %s3212_s3, 6144 }
 0x20a   :  { %p2616_p1 = scmp.ne.s32.totalorder %s3212_s3, %s2615_s29  ;;  %p2619_p2 = scmp.lt.u32.totalorder %s2615_s29, %s3212_s3 }
 0x20c   :  { %p2621_p3 = pnand %p2619_p2, %p2616_p1 }
 0x20e   :  { %2624 = shalt.err (!%p2621_p3)
}
 0x20f   :  { %2202 = dma.vmem_to_hbm [thread:$0]  %s2197_s25, 6144, %s3212_s3, [#allocation5], %s2632_s22, %s2632_s22, %s2633_s23  }
 0x210   :  { %2629 = dma.done.wait [#allocation5], 6144  }
 0x211   :  { %2630 = vsyncadd [#allocation5], 4294961152 }
 0x212   :  { %2206 = vsyncpa [#allocation4], 1 }
 0x213   :  { %2207 = vsyncpa [#allocation7], 1 }
 0x214   :  { %2208 = vsyncpa [#allocation5], 1 }

</bundles_post_ra>
